<compile_context>
chip_gen: v5e
topology: v5e:2x2
jax: 0.10.0
libtpu: 0.0.40
codegen_flags: <defaults>
</compile_context>

<pallas_src>
import math

import jax
import jax.numpy as jnp
from jax.experimental import pallas as pl
from jax.experimental.pallas import tpu as pltpu


def _lff_kernel(x_ref, w_ref, b_ref, o_ref):
    # x_ref: (C_in, TILE_PX)   pixel tile: channels on sublanes, pixels on lanes
    # w_ref: (C_out, C_in)     full 1x1-conv weight (resident, constant block)
    # b_ref: (C_out, 1)        bias, broadcast over the pixel (lane) axis
    # o_ref: (C_out, TILE_PX)  output tile (lane-dense -> unmasked stores)
    y = jnp.dot(w_ref[...], x_ref[...], preferred_element_type=jnp.float32)
    o_ref[...] = jnp.sin(y + b_ref[...]).astype(o_ref.dtype)


def _pick_tile_px(hw, max_tile=2048):
    """Pick the pixel-tile size.

    Returns (tile_px, needs_pad).  Prefers the largest multiple-of-128 divisor
    of `hw` that is <= max_tile (no padding needed).  Falls back to a
    full-extent block for small hw, or to padding for awkward pixel counts.
    """
    best = None
    d = 128
    limit = min(hw, max_tile)
    while d <= limit:
        if hw % d == 0:
            best = d
        d += 128
    if best is not None:
        return best, False
    if hw <= max_tile:
        # Full-extent last-dim block is always legal.
        return hw, False
    return min(1024, max_tile), True


def lff_forward(x_nchw, weight, bias, *, max_tile_px=2048):
    """LFF forward: sin(conv1x1(x)).

    Args:
      x_nchw: [B, C_in, H, W] float32 (NCHW, matching PyTorch).
      weight: [C_out, C_in] float32 (squeezed 1x1 conv weight).
      bias:   [C_out] float32.
    Returns:
      [B, C_out, H, W] float32.
    """
    B, C_in, H, W = x_nchw.shape
    C_out = weight.shape[0]
    HW = H * W

    # Free reshape (merges trailing contiguous dims); no transpose, no copy.
    x = x_nchw.reshape(B, C_in, HW)

    tile_px, needs_pad = _pick_tile_px(HW, max_tile_px)
    HW_pad = HW
    if needs_pad:
        # Rare fallback for pixel counts with no multiple-of-128 divisor.
        HW_pad = pl.cdiv(HW, tile_px) * tile_px
        x = jnp.pad(x, ((0, 0), (0, 0), (0, HW_pad - HW)))

    b_2d = bias.reshape(C_out, 1)  # broadcast over pixels inside the kernel

    grid = (B, HW_pad // tile_px)

    out = pl.pallas_call(
        _lff_kernel,
        out_shape=jax.ShapeDtypeStruct((B, C_out, HW_pad), jnp.float32),
        grid_spec=pltpu.PrefetchScalarGridSpec(
            num_scalar_prefetch=0,
            grid=grid,
            in_specs=[
                # (batch squeezed, C_in, tile_px) pixel tile of x.
                pl.BlockSpec((None, C_in, tile_px), lambda b, j: (b, 0, j)),
                # Weight and bias: constant block index -> kept resident.
                pl.BlockSpec((C_out, C_in), lambda b, j: (0, 0)),
                pl.BlockSpec((C_out, 1), lambda b, j: (0, 0)),
            ],
            out_specs=pl.BlockSpec((None, C_out, tile_px),
                                   lambda b, j: (b, 0, j)),
        ),
        compiler_params=pltpu.CompilerParams(
            # Both axes independent -> shard across v7x's 2 TensorCores.
            dimension_semantics=("parallel", "parallel"),
            # Tiles are small; 32 MiB is safe on v5e/v6e/v7x and raises v5e's
            # 16 MiB scoped default just in case of larger images.
            vmem_limit_bytes=32 * 1024 * 1024,
        ),
    )(x, weight, b_2d)

    if needs_pad:
        out = out[:, :, :HW]
    # Free reshape back to NCHW: (B, C_out, HW) -> (B, C_out, H, W).
    return out.reshape(B, C_out, H, W)


def init_lff_params(key, hidden_size, coord_size=3):
    """Deterministic init matching the PyTorch module's __init__ semantics."""
    k_w, k_b = jax.random.split(key)
    # ConLinear with is_first=True: uniform(-sqrt(9/ch_in), sqrt(9/ch_in)).
    w_bound = math.sqrt(9.0 / coord_size)
    weight = jax.random.uniform(
        k_w, (hidden_size, coord_size), dtype=jnp.float32,
        minval=-w_bound, maxval=w_bound)
    # Conv2d default bias init: uniform(-1/sqrt(fan_in), 1/sqrt(fan_in)).
    b_bound = 1.0 / math.sqrt(coord_size)
    bias = jax.random.uniform(
        k_b, (hidden_size,), dtype=jnp.float32,
        minval=-b_bound, maxval=b_bound)
    return weight, bias


if __name__ == "__main__":
    key = jax.random.PRNGKey(0)
    k_x, k_p = jax.random.split(key)

    B, coord_size, H, W = 2, 3, 16, 16
    hidden_size = 32

    x = jax.random.normal(k_x, (B, coord_size, H, W), dtype=jnp.float32)
    weight, bias = init_lff_params(k_p, hidden_size, coord_size)

    out = lff_forward(x, weight, bias)
    out = jax.block_until_ready(out)

    # Pure-JAX reference check (1x1 conv == einsum over channels, then sin).
    ref = jnp.sin(
        jnp.einsum("bchw,oc->bohw", x, weight) + bias[None, :, None, None])
    assert out.shape == (B, hidden_size, H, W)
    assert jnp.allclose(out, ref, atol=1e-5, rtol=1e-5)

    print("KERNEL_OK")
</pallas_src>

<mosaic_0001>
module attributes {stable_mosaic.version = 11 : i64} {
  func.func @_lff_kernel(%arg0: i32, %arg1: i32, %arg2: memref<1x3x256xf32, #tpu.memory_space<vmem>>, %arg3: memref<32x3xf32, #tpu.memory_space<vmem>>, %arg4: memref<32x1xf32, #tpu.memory_space<vmem>>, %arg5: memref<1x32x256xf32, #tpu.memory_space<vmem>>) attributes {dimension_semantics = [#tpu.dimension_semantics<parallel>, #tpu.dimension_semantics<parallel>], iteration_bounds = array<i64: 2, 1>, scalar_prefetch = 0 : i64, scratch_operands = 0 : i64, tpu.core_type = #tpu.core_type<tc>, window_params = [{transform_indices = @transform_0, window_bounds = array<i64: 1, 3, 256>}, {pipeline_mode = #tpu.pipeline_mode<synchronous>, transform_indices = @transform_1, window_bounds = array<i64: 32, 3>}, {pipeline_mode = #tpu.pipeline_mode<synchronous>, transform_indices = @transform_2, window_bounds = array<i64: 32, 1>}, {transform_indices = @transform_3, window_bounds = array<i64: 1, 32, 256>}]} {
    %c0 = arith.constant 0 : index
    %c0_0 = arith.constant 0 : index
    %0 = vector.load %arg3[%c0, %c0_0] : memref<32x3xf32, #tpu.memory_space<vmem>>, vector<32x3xf32>
    %c0_1 = arith.constant 0 : index
    %c0_2 = arith.constant 0 : index
    %c0_3 = arith.constant 0 : index
    %1 = vector.load %arg2[%c0_1, %c0_2, %c0_3] : memref<1x3x256xf32, #tpu.memory_space<vmem>>, vector<1x3x256xf32>
    %2 = vector.shape_cast %1 : vector<1x3x256xf32> to vector<3x256xf32>
    %cst = arith.constant dense<0.000000e+00> : vector<32x256xf32>
    %3 = tpu.matmul %0, %2, %cst {dimension_numbers = #tpu.dot_dimension_numbers<[1], [0], [0], [1], [0, 0, 1, 1], [], []>} : vector<32x3xf32>, vector<3x256xf32>, vector<32x256xf32> -> vector<32x256xf32>
    %c0_4 = arith.constant 0 : index
    %c0_5 = arith.constant 0 : index
    %4 = vector.load %arg4[%c0_4, %c0_5] : memref<32x1xf32, #tpu.memory_space<vmem>>, vector<32x1xf32>
    %5 = vector.broadcast %4 : vector<32x1xf32> to vector<32x256xf32>
    %6 = arith.addf %3, %5 : vector<32x256xf32>
    %7 = math.sin %6 : vector<32x256xf32>
    %c0_6 = arith.constant 0 : index
    %c0_7 = arith.constant 0 : index
    %c0_8 = arith.constant 0 : index
    %8 = vector.load %arg5[%c0_6, %c0_7, %c0_8] : memref<1x32x256xf32, #tpu.memory_space<vmem>>, vector<1x32x256xf32>
    %9 = vector.shape_cast %8 : vector<1x32x256xf32> to vector<32x256xf32>
    %10 = vector.shape_cast %7 : vector<32x256xf32> to vector<1x32x256xf32>
    tpu.vector_store %arg5[%c0_6, %c0_7, %c0_8], %10 {strides = array<i32>} : memref<1x32x256xf32, #tpu.memory_space<vmem>>, vector<1x32x256xf32>,
    return
  }
  func.func @transform_0(%arg0: i32, %arg1: i32) -> (i32, i32, i32) {
    %c0_i32 = arith.constant 0 : i32
    %c0_i32_0 = arith.constant 0 : i32
    return %arg0, %c0_i32, %arg1 : i32, i32, i32
  }
  func.func @transform_1(%arg0: i32, %arg1: i32) -> (i32, i32) {
    %c0_i32 = arith.constant 0 : i32
    %c0_i32_0 = arith.constant 0 : i32
    %c0_i32_1 = arith.constant 0 : i32
    return %c0_i32, %c0_i32_0 : i32, i32
  }
  func.func @transform_2(%arg0: i32, %arg1: i32) -> (i32, i32) {
    %c0_i32 = arith.constant 0 : i32
    %c0_i32_0 = arith.constant 0 : i32
    %c0_i32_1 = arith.constant 0 : i32
    return %c0_i32, %c0_i32_0 : i32, i32
  }
  func.func @transform_3(%arg0: i32, %arg1: i32) -> (i32, i32, i32) {
    %c0_i32 = arith.constant 0 : i32
    %c0_i32_0 = arith.constant 0 : i32
    return %arg0, %c0_i32, %arg1 : i32, i32, i32
  }
}

</mosaic_0001>

<bundles_post_ra>
// kernel: tpu_custom_call.1
= control target key start
LH: loop header
LB: loop body
LE: loop exit
PB: predicated region body
PF: predicated region fallthrough
CT: control target
= control target key end

     0   :  { %8 = vsyncpa [#allocation3], 0  ;;  %s2882_s0 = inlined_call_operand.vmem [shape: f32[2,3,256], index: 0, kind: input, shape index: {}]   ;;  %s2883_s1 = inlined_call_operand.vmem [shape: f32[32,3], index: 1, kind: input, shape index: {}]   ;;  %s2884_s2 = inlined_call_operand.vmem [shape: f32[32,1], index: 2, kind: input, shape index: {}]   ;;  %s2885_s3 = inlined_call_operand.hbm [shape: f32[2,32,256], index: 3, kind: output, shape index: {}]  }
   0x1   :  { %10 = vsyncpa [#allocation3 + $0x1], 0  ;;  %s1880_s12 = smov 0   ;;  %s1882_s13 = smov 0  }
   0x2   :  { %s1884_s14 = smov 0   ;;  %s1886_s15 = smov 0  }
   0x3   :  { %s1888_s16 = smov 0   ;;  %s1890_s17 = smov 0  }
   0x4 LB: > { %s1654_s18 = sadd.s32 4294967295, %s1849_s17   ;;  %s1655_s19 = sadd.s32 4294967294, %s1849_s17   ;;  %s1849_s17 = sphi %s1890_s17, %s16_s17   ;;  %s1845_s16 = sphi %s1888_s16, %s2902_s16   ;;  %s1841_s15 = sphi %s1886_s15, %s2901_s15   ;;  %s1837_s14 = sphi %s1884_s14, %s2900_s14   ;;  %s1833_s13 = sphi %s1882_s13, %s2899_s13   ;;  %s1829_s12 = sphi %s1880_s12, %s2898_s12  }
   0x5   : > { %s28_s20 = sadd.s32 1, %s1845_s16  ;;  %s107_s21 = sadd.s32 1, %s1837_s14 }
   0x6   : > { %p30_p0 = scmp.ge.s32.totalorder %s28_s20, 2  ;;  %p117_p1 = scmp.ne.s32.totalorder %s1837_s14, %s1833_s13 }
   0x7   : > { %p118_p2 = scmp.eq.s32.totalorder %s1654_s18, 1  ;;  %p123_p3 = scmp.ne.s32.totalorder %s1833_s13, %s1829_s12 }
   0x8   : > { %s2904_s20 = smov (%p30_p0, %s28_s20), 0  ;;  %p124_p5 = scmp.eq.s32.totalorder %s1655_s19, 1 }
   0x9   : > { %p1920_p4 = por %p118_p2, %p117_p1  ;;  %s102_s23 = ssub.s32 %s1845_s16, %s2904_s20 }
   0xa   : > { %p1658_p6 = scmp.ge.s32.totalorder %s1849_s17, 1  ;;  %p105_p7 = scmp.eq.s32.totalorder %s102_s23, 0 }
   0xb   : > { %p1927_p8 = por %p124_p5, %p123_p3  ;;  %p161_p9 = scmp.lt.s32.totalorder %s1849_s17, 3 }
   0xc   : > { %s1933_s25 = scalar_select %p105_p7, %s1837_s14, %s107_s21  }
   0xd   : > { %p162_p10 = pnand %p1658_p6, %p161_p9 }
   0xe   : > { %p190_p11 = scmp.lt.s32.totalorder (!%p162_p10), %s1841_s15, 1  ;;  %s186_s30 = sand.u32 (!%p162_p10), 1, %s1833_s13  }
   0xf   : > { %165 = sbr.rel (%p162_p10) target bundleno = 509 (0x1fd), region = 32  ;;  %s1702_s6 = sshll.u32 (!%p162_p10), %s1841_s15, 6 }
  0x10   : > { %s1571_s9 = scalar_lea.hbm (!%p162_p10), %s2885_s3, %s1702_s6  ;;  %s1791_s26 = scalar_lea.hbm (!%p162_p10), %s2885_s3, 128 }
  0x11   : > { %s1574_s11 = sshll.u32 (!%p162_p10), %s1571_s9, 4  ;;  %s1575_s11 = int_to_ptr.hbm [resolvable:$true] %s1574_s11 }
  0x12   : > { %s1785_s18 = sshra.s32 (!%p162_p10), %s1575_s11, 4  ;;  %s1786_s18 = int_to_ptr.hbm [resolvable:$true] %s1785_s18 }
  0x13   : > { %s1787_s19 = scalar_lea.hbm (!%p162_p10), %s1786_s18, 64  ;;  %p1792_p1 = scmp.lt.s32.totalorder (!%p162_p10), %s1786_s18, %s2885_s3 }
  0x14   : > { %v1851_v0 = vmov 0   ;;  %v207_v1 = vld [vmem:[%s2884_s2 + $0x10] sm:$0xff]  ;;  %s191_s28 = scalar_select %p190_p11, %s1841_s15, 1  ;;  %v205_v2 = vld [vmem:[%s2884_s2] sm:$0xff]  ;;  %v208_v4 = vld [vmem:[%s2884_s2 + $0x18] sm:$0xff]  ;;  %vm246_vm0 = vcmask 1042432  }
  0x15   : > { %1770 = vset.pattern.permute.xlu1 %v1851_v0  ;;  %1769 = vset.pattern.permute.xlu0 %v1851_v0  ;;  %v206_v5 = vld [vmem:[%s2884_s2 + $0x8] sm:$0xff]  ;;  %v200_v6 = vld [vmem:[%s2883_s1] sm:$0xff]  ;;  %vm233_vm1 = vcmask 23552   ;;  %v202_v7 = vld [vmem:[%s2883_s1 + $0x10] sm:$0xff]  ;;  %v1852_v41 = vmov 683565275   ;;  %p1788_p12 = scmp.ne.s32.totalorder %s1786_s18, %s1787_s19  ;;  %p1793_p2 = scmp.lt.s32.totalorder %s1791_s26, %s1787_s19 }
  0x16   : > { %221 = vperm.xlu1 %1770, %v207_v1   ;;  %211 = vperm.xlu0 %1769, %v205_v2   ;;  %s1701_s4 = sshll.u32 %s191_s28, 3  ;;  %v201_v10 = vld [vmem:[%s2883_s1 + $0x8] sm:$0xff]  ;;  %v203_v11 = vld [vmem:[%s2883_s1 + $0x18] sm:$0xff]  ;;  %v1853_v43 = vmov 2475754826   ;;  %s1558_s15 = scalar_lea.sflag [#allocation3], %s186_s30 }
  0x17   : > { %s197_s7 = scalar_lea.vmem %s2882_s0, %s1701_s4  ;;  %v1854_v45 = vmov 2131351028   ;;  %v1855_v47 = vmov 2102212464   ;;  %v1856_v49 = vmov 920167782   ;;  %p1789_p13 = pnand %p1788_p12, %p1920_p4 }
  0x18   : > { %v204_v3 = vld [vmem:[%s197_s7] sm:$0x77]  ;;  %v1857_v58 = vmov 1326507024   ;;  %s1659_s4 = sshll.u32 %s186_s30, 6  ;;  %p1794_p3 = por %p1793_p2, %p1792_p1 }
  0x19   : > { %230 = vst [vmem:[#allocation1] ss:$2 sm:$0xff] %v204_v3  ;;  %s2276_s5 = scalar_lea.vmem [#allocation2], %s1659_s4  ;;  %p1790_p0 = pneg %p1789_p13 }
  0x1a   : > { %s1572_s10 = sshll.u32 %s2276_s5, 4  ;;  %s1573_s10 = int_to_ptr.vmem [resolvable:$true] %s1572_s10 }
  0x1b   : > { %p1795_p5 = pnand %p1794_p3, %p1790_p0 }
  0x1e   : > { %226 = vperm.xlu1 %1770, %v208_v4   ;;  %216 = vperm.xlu0 %1769, %v206_v5  }
  0x20   : > { %v231_v8 = vld.sshfl [vmem:[#allocation1] sm:$0xff pattern:$0x75316420]  ;;  %v232_v9 = vld.sshfl [vmem:[#allocation1 + $0x8] sm:$0xff pattern:$0x75316420] }
  0x21   : > { %1662 = vmatpush.msk.msra.mxu0 %vm246_vm0, %v231_v8  ;;  %1703 = vmatpush.msk.msra.mxu2 %vm246_vm0, %v231_v8 }
  0x22   : > { %1667 = vmatpush.msk.msra.mxu1 %vm246_vm0, %v232_v9  ;;  %1704 = vmatpush.msk.msra.mxu3 %vm246_vm0, %v232_v9 }
  0x23   : > { %1663 = vmatmul.msk.f32.vlgmr.msra.gmra.mxu0 %vm233_vm1, %v200_v6  ;;  %1665 = vmatmul.msk.f32.vlgmr.msra.gmra.mxu2 %vm233_vm1, %v202_v7 }
  0x24   : > { %1668 = vmatmul.msk.f32.vlgmr.msra.gmra.mxu1 %vm233_vm1, %v200_v6  ;;  %1670 = vmatmul.msk.f32.vlgmr.msra.gmra.mxu3 %vm233_vm1, %v202_v7 }
  0x2b   : > { %1664 = vmatmul.msk.f32.gmra.mxu0 %vm233_vm1, %v201_v10  ;;  %1666 = vmatmul.msk.f32.gmra.mxu2 %vm233_vm1, %v203_v11 }
  0x2c   : > { %1669 = vmatmul.msk.f32.gmra.mxu1 %vm233_vm1, %v201_v10  ;;  %1671 = vmatmul.msk.f32.gmra.mxu3 %vm233_vm1, %v203_v11 }
  0x88   : > { %v212_v12 = vpop.permute.xlu0 %211  ;;  %v1986_v31 = vpop.permute.xlu1 %221 }
  0xa0   : > { %v268_v13 = vpop.f32.mrf.mxu0 }
  0xa1   : > { %v1974_v14 = vadd.f32 %v268_v13, %v212_v12  ;;  %v297_v15 = vpop.f32.mrf.mxu1 }
  0xa2   : > { %v1976_v16 = vadd.f32 %v297_v15, %v212_v12 }
  0xa3   : > { %v309_v17 = vand.u32 2147483647, %v1974_v14  ;;  %v312_v18 = vand.u32 2139095040, %v1974_v14 }
  0xa4   : > { %v464_v19 = vand.u32 2147483647, %v1976_v16  ;;  %v467_v20 = vand.u32 2139095040, %v1976_v16 }
  0xa5   : > { %v313_v21 = vshrl.u32 %v312_v18, 23  ;;  %v316_v22 = vand.u32 8388607, %v309_v17 }
  0xa6   : > { %v468_v23 = vshrl.u32 %v467_v20, 23  ;;  %v471_v26 = vand.u32 8388607, %v464_v19  ;;  %v274_v29 = vpop.f32.mrf.mxu2 }
  0xa7   : > { %v1672_v24 = vadd.s32 4294967169, %v313_v21  ;;  %v317_v27 = vor.u32 8388608, %v316_v22  ;;  %v1989_v34 = vadd.f32 %v274_v29, %v1986_v31 }
  0xa8   : > { %v1675_v25 = vadd.s32 4294967169, %v468_v23  ;;  %v472_v33 = vor.u32 8388608, %v471_v26 }
  0xa9   : > { %v319_v28 = vadd.s32 1, %v1672_v24  ;;  %v1991_v36 = vshll.u32 %v317_v27, 8  ;;  %v932_v52 = vand.u32 2139095040, %v1989_v34 }
  0xaa   : > { %v474_v30 = vadd.s32 1, %v1675_v25  ;;  %v2002_v51 = vshll.u32 %v472_v33, 8 }
  0xab   : > { %vm320_vm2 = vcmp.gt.s32.totalorder %v319_v28, 0  ;;  %v358_v56 = vand.u32 65535, %v1991_v36  ;;  %v359_v3 = vshrl.u32 %v1991_v36, 16 }
  0xac   : > { %v321_v32 = vsel %vm320_vm2, %v319_v28, 0  ;;  %vm475_vm3 = vcmp.gt.s32.totalorder %v474_v30, 0  ;;  %v2047_v22 = vand.u32 65535, %v2002_v51 }
  0xad   : > { %v323_v35 = vand.u32 31, %v321_v32  ;;  %v476_v37 = vsel %vm475_vm3, %v474_v30, 0  ;;  %v1993_v38 = vshrl.u32 %v321_v32, 5 }
  0xae   : > { %v1995_v39 = vand.u32 31, %v476_v37  ;;  %v2053_v29 = vshrl.u32 %v476_v37, 5 }
  0xaf   : > { %v324_v40 = vsub.s32 32, %v323_v35  ;;  %v326_v42 = vshll.u32 %v1852_v41, %v323_v35  ;;  %v329_v44 = vshll.u32 %v1853_v43, %v323_v35  ;;  %v332_v46 = vshll.u32 %v1854_v45, %v323_v35 }
  0xb0   : > { %v335_v48 = vshll.u32 %v1855_v47, %v323_v35  ;;  %v338_v50 = vshll.u32 %v1856_v49, %v323_v35  ;;  %vm341_vm4 = vcmp.lt.s32.totalorder %v1993_v38, 1  ;;  %vm344_vm5 = vcmp.lt.s32.totalorder %v1993_v38, 4 }
  0xb1   : > { %v327_v53 = vshrl.u32 %v1853_v43, %v324_v40  ;;  %v330_v54 = vshrl.u32 %v1854_v45, %v324_v40  ;;  %v333_v55 = vshrl.u32 %v1855_v47, %v324_v40  ;;  %v336_v57 = vshrl.u32 %v1856_v49, %v324_v40 }
  0xb2   : > { %v339_v59 = vshrl.u32 %v1857_v58, %v324_v40  ;;  %v2014_v63 = vsub.s32 32, %v1995_v39  ;;  %vm343_vm6 = vcmp.lt.s32.totalorder %v1993_v38, 3  ;;  %v325_v4 = vshrl.u32 %v1852_v41, %v324_v40 }
  0xb3   : > { %v328_v60 = vor.u32 %v327_v53, %v326_v42  ;;  %v331_v61 = vor.u32 %v330_v54, %v329_v44  ;;  %v334_v62 = vor.u32 %v333_v55, %v332_v46  ;;  %v337_v1 = vor.u32 %v336_v57, %v335_v48 }
  0xb4   : > { %v340_v2 = vor.u32 %v339_v59, %v338_v50  ;;  %vm342_vm7 = vcmp.lt.s32.totalorder %v1993_v38, 2  ;;  %v481_v9 = vshll.u32 %v1852_v41, %v1995_v39  ;;  %v484_v10 = vshll.u32 %v1853_v43, %v1995_v39 }
  0xb5   : > { %v349_v5 = vsel %vm341_vm4, %v328_v60, %v331_v61  ;;  %v353_v6 = vsel %vm341_vm4, %v331_v61, %v334_v62  ;;  %v350_v7 = vsel %vm344_vm5, %v337_v1, 920167782  ;;  %v346_v11 = vsel %vm344_vm5, %v334_v62, 2102212464 }
  0xb6   : > { %v354_v8 = vsel %vm344_vm5, %v340_v2, 1326507024  ;;  %v351_v12 = vsel %vm343_vm6, %v334_v62, %v350_v7  ;;  %v482_v15 = vshrl.u32 %v1853_v43, %v2014_v63  ;;  %v485_v21 = vshrl.u32 %v1854_v45, %v2014_v63 }
  0xb7   : > { %v355_v13 = vsel %vm343_vm6, %v337_v1, %v354_v8  ;;  %v352_v18 = vsel %vm342_vm7, %v349_v5, %v351_v12  ;;  %v345_v27 = vsel %vm341_vm4, %v325_v4, %v328_v60  ;;  %v347_v28 = vsel %vm343_vm6, %v331_v61, %v346_v11 }
  0xb8   : > { %v356_v20 = vsel %vm342_vm7, %v353_v6, %v355_v13  ;;  %v382_v25 = vand.u32 65535, %v352_v18  ;;  %v383_v26 = vshrl.u32 %v352_v18, 16  ;;  %v2055_v30 = vor.u32 %v482_v15, %v481_v9 }
  0xb9   : > { %v360_v23 = vand.u32 65535, %v356_v20  ;;  %v361_v24 = vshrl.u32 %v356_v20, 16  ;;  %v2057_v35 = vor.u32 %v485_v21, %v484_v10  ;;  %v487_v40 = vshll.u32 %v1854_v45, %v1995_v39 }
  0xba   : > { %v385_v44 = vmul.u32 %v383_v26, %v358_v56  ;;  %v386_v46 = vmul.u32 %v382_v25, %v359_v3  ;;  %v488_v48 = vshrl.u32 %v1855_v47, %v2014_v63  ;;  %v384_v54 = vmul.u32 %v382_v25, %v358_v56 }
  0xbb   : > { %v363_v32 = vmul.u32 %v361_v24, %v358_v56  ;;  %v364_v33 = vmul.u32 %v360_v23, %v359_v3  ;;  %v362_v42 = vmul.u32 %v360_v23, %v358_v56  ;;  %v365_v50 = vmul.u32 %v361_v24, %v359_v3 }
  0xbc   : > { %v387_v37 = vmul.u32 %v383_v26, %v359_v3  ;;  %v388_v60 = vshll.u32 %v385_v44, 16  ;;  %v390_v62 = vshll.u32 %v386_v46, 16  ;;  %v490_v1 = vshll.u32 %v1855_v47, %v1995_v39 }
  0xbd   : > { %v366_v53 = vshll.u32 %v363_v32, 16  ;;  %v367_v55 = vshrl.u32 %v363_v32, 16  ;;  %v368_v57 = vshll.u32 %v364_v33, 16  ;;  %v369_v59 = vshrl.u32 %v364_v33, 16 }
  0xbe   : > { %vm392_vm9 = vc.u32 %v384_v54, %v388_v60  ;;  %v394_v4 = vadd.s32 %v388_v60, %v384_v54  ;;  %v491_v5 = vshrl.u32 %v1856_v49, %v2014_v63  ;;  %v493_v3 = vshll.u32 %v1856_v49, %v1995_v39 }
  0xbf   : > { %vm370_vm8 = vc.u32 %v362_v42, %v366_v53  ;;  %v372_v61 = vadd.s32 %v366_v53, %v362_v42  ;;  %v393_v56 = vsel %vm392_vm9, 1, %v1851_v0  ;;  %v489_v9 = vor.u32 %v488_v48, %v487_v40 }
  0xc0   : > { %v371_v2 = vsel %vm370_vm8, 1, %v1851_v0  ;;  %v395_v8 = vadd.s32 %v393_v56, %v387_v37  ;;  %vm396_vm11 = vc.u32 %v394_v4, %v390_v62  ;;  %v492_v12 = vor.u32 %v491_v5, %v490_v1 }
  0xc1   : > { %v373_v6 = vadd.s32 %v371_v2, %v365_v50  ;;  %vm374_vm10 = vc.u32 %v372_v61, %v368_v57  ;;  %v397_v11 = vsel %vm396_vm11, 1, %v1851_v0  ;;  %v494_v13 = vshrl.u32 %v1857_v58, %v2014_v63 }
  0xc2   : > { %v375_v7 = vsel %vm374_vm10, 1, %v1851_v0  ;;  %v389_v15 = vshrl.u32 %v385_v44, 16  ;;  %v399_v18 = vadd.s32 %v397_v11, %v395_v8  ;;  %vm496_vm12 = vcmp.lt.s32.totalorder %v2053_v29, 1 }
  0xc3   : > { %v377_v10 = vadd.s32 %v375_v7, %v373_v6  ;;  %vm498_vm13 = vcmp.lt.s32.totalorder %v2053_v29, 3  ;;  %v391_v39 = vshrl.u32 %v386_v46, 16  ;;  %v495_v21 = vor.u32 %v494_v13, %v493_v3 }
  0xc4   : > { %vm499_vm14 = vcmp.lt.s32.totalorder %v2053_v29, 4  ;;  %v2078_v23 = vadd.s32 %v394_v4, %v390_v62  ;;  %v400_v24 = vadd.s32 %v399_v18, %v389_v15  ;;  %v504_v25 = vsel %vm496_vm12, %v2055_v30, %v2057_v35 }
  0xc5   : > { %v378_v20 = vadd.s32 %v377_v10, %v367_v55  ;;  %v505_v26 = vsel %vm499_vm14, %v492_v12, 920167782  ;;  %vm497_vm15 = vcmp.lt.s32.totalorder %v2053_v29, 2  ;;  %v508_v40 = vsel %vm496_vm12, %v2057_v35, %v489_v9 }
  0xc6   : > { %v506_v33 = vsel %vm498_vm13, %v489_v9, %v505_v26  ;;  %v348_v42 = vsel %vm342_vm7, %v345_v27, %v347_v28  ;;  %v401_v44 = vadd.s32 %v400_v24, %v391_v39  ;;  %v509_v48 = vsel %vm499_vm14, %v495_v21, 1326507024 }
  0xc7   : > { %v2086_v32 = vadd.s32 %v378_v20, %v369_v59  ;;  %v507_v46 = vsel %vm497_vm15, %v504_v25, %v506_v33  ;;  %v510_v50 = vsel %vm498_vm13, %v492_v12, %v509_v48  ;;  %v514_v53 = vshrl.u32 %v2002_v51, 16 }
  0xc8   : > { %v537_v54 = vand.u32 65535, %v507_v46  ;;  %v405_v37 = vadd.s32 1, %v401_v44  ;;  %v511_v38 = vsel %vm497_vm15, %v508_v40, %v510_v50  ;;  %v538_v27 = vshrl.u32 %v507_v46, 16 }
  0xc9   : > { %vm404_vm0 = vc.u32 %v2086_v32, %v2078_v23  ;;  %v933_v28 = vshrl.u32 %v932_v52, 23  ;;  %v402_v55 = vmul.u32 %v1991_v36, %v348_v42  ;;  %v515_v57 = vand.u32 65535, %v511_v38 }
  0xca   : > { %v516_v59 = vshrl.u32 %v511_v38, 16  ;;  %v929_v60 = vand.u32 2147483647, %v1989_v34  ;;  %v406_v61 = vsel %vm404_vm0, %v405_v37, %v401_v44  ;;  %v480_v62 = vshrl.u32 %v1852_v41, %v2014_v63 }
  0xcb   : > { %v540_v1 = vmul.u32 %v538_v27, %v2047_v22  ;;  %v541_v2 = vmul.u32 %v537_v54, %v514_v53  ;;  %v407_v4 = vadd.s32 %v406_v61, %v402_v55  ;;  %v501_v5 = vsel %vm499_vm14, %v489_v9, 2102212464 }
  0xcc   : > { %v518_v6 = vmul.u32 %v516_v59, %v2047_v22  ;;  %v519_v52 = vmul.u32 %v515_v57, %v514_v53  ;;  %v539_v36 = vmul.u32 %v537_v54, %v2047_v22  ;;  %v542_v56 = vmul.u32 %v538_v27, %v514_v53 }
  0xcd   : > { %v543_v3 = vshll.u32 %v540_v1, 16  ;;  %v1684_v7 = vadd.s32 4294967169, %v933_v28  ;;  %v408_v8 = vadd.s32 536870912, %v407_v4  ;;  %v517_v10 = vmul.u32 %v515_v57, %v2047_v22 }
  0xce   : > { %v520_v11 = vmul.u32 %v516_v59, %v514_v53  ;;  %v521_v63 = vshll.u32 %v518_v6, 16  ;;  %v523_v12 = vshll.u32 %v519_v52, 16  ;;  %v545_v13 = vshll.u32 %v541_v2, 16 }
  0xcf   : > { %vm547_vm1 = vc.u32 %v539_v36, %v543_v3  ;;  %v549_v15 = vadd.s32 %v543_v3, %v539_v36  ;;  %v409_v18 = vshrl.u32 %v408_v8, 30  ;;  %v936_v24 = vand.u32 8388607, %v929_v60 }
  0xd0   : > { %vm525_vm2 = vc.u32 %v517_v10, %v521_v63  ;;  %v527_v9 = vadd.s32 %v521_v63, %v517_v10  ;;  %v548_v20 = vsel %vm547_vm1, 1, %v1851_v0  ;;  %v500_v22 = vsel %vm496_vm12, %v480_v62, %v2055_v30 }
  0xd1   : > { %v526_v39 = vsel %vm525_vm2, 1, %v1851_v0  ;;  %v550_v21 = vadd.s32 %v548_v20, %v542_v56  ;;  %vm551_vm3 = vc.u32 %v549_v15, %v545_v13  ;;  %v410_v25 = vshll.u32 %v409_v18, 30 }
  0xd2   : > { %v528_v26 = vadd.s32 %v526_v39, %v520_v11  ;;  %vm529_vm4 = vc.u32 %v527_v9, %v523_v12  ;;  %v502_v33 = vsel %vm498_vm13, %v2057_v35, %v501_v5  ;;  %v552_v42 = vsel %vm551_vm3, 1, %v1851_v0 }
  0xd3   : > { %v530_v40 = vsel %vm529_vm4, 1, %v1851_v0  ;;  %v939_v44 = vadd.s32 1, %v1684_v7  ;;  %v411_v46 = vsub.s32 %v407_v4, %v410_v25  ;;  %v522_v48 = vshrl.u32 %v518_v6, 16 }
  0xd4   : > { %v532_v50 = vadd.s32 %v530_v40, %v528_v26  ;;  %v554_v53 = vadd.s32 %v552_v42, %v550_v21  ;;  %vm311_vm5 = vcmp.lt.s32.totalorder %v1974_v14, 0  ;;  %v433_v54 = vsub.s32 4, %v409_v18 }
  0xd5   : > { %v544_v37 = vshrl.u32 %v540_v1, 16  ;;  %vm940_vm6 = vcmp.gt.s32.totalorder %v939_v44, 0  ;;  %vm412_vm7 = vcmp.lt.s32.totalorder %v411_v46, 0  ;;  %v413_v30 = vsub.s32 0, %v411_v46 }
  0xd6   : > { %v524_v38 = vshrl.u32 %v519_v52, 16  ;;  %v533_v27 = vadd.s32 %v532_v50, %v522_v48  ;;  %v503_v35 = vsel %vm497_vm15, %v500_v22, %v502_v33  ;;  %v546_v28 = vshrl.u32 %v541_v2, 16 }
  0xd7   : > { %v555_v55 = vadd.s32 %v554_v53, %v544_v37  ;;  %v941_v57 = vsel %vm940_vm6, %v939_v44, 0  ;;  %v414_v59 = vsel %vm412_vm7, %v413_v30, %v411_v46  ;;  %v2136_v62 = vadd.s32 %v549_v15, %v545_v13 }
  0xd8   : > { %v2134_v61 = vadd.s32 %v533_v27, %v524_v38  ;;  %v937_v4 = vor.u32 8388608, %v936_v24  ;;  %v415_v5 = vclz %v414_v59  ;;  %v434_v1 = vsel %vm311_vm5, %v433_v54, %v409_v18 }
  0xd9   : > { %v556_v6 = vadd.s32 %v555_v55, %v546_v28  ;;  %v943_v36 = vand.u32 31, %v941_v57  ;;  %vm2142_vm8 = vcmp.le.f32.partialorder %v309_v17, 0.7853982  ;;  %v403_v2 = vadd.s32 %v2078_v23, %v2086_v32 }
  0xda   : > { %v557_v52 = vmul.u32 %v2002_v51, %v503_v35  ;;  %v1673_v56 = vadd.s32 4294967294, %v415_v5  ;;  %vm559_vm9 = vc.u32 %v2134_v61, %v2136_v62  ;;  %v436_v8 = vsel %vm2142_vm8, 0, %v434_v1 }
  0xdb   : > { %v560_v3 = vadd.s32 1, %v556_v6  ;;  %v944_v7 = vsub.s32 32, %v943_v36  ;;  %v2153_v10 = vshrl.u32 %v941_v57, 5  ;;  %v946_v17 = vshll.u32 %v1852_v41, %v943_v36 }
  0xdc   : > { %v2156_v11 = vshll.u32 %v937_v4, 8  ;;  %vm1674_vm10 = vcmp.lt.s32.totalorder %v1673_v56, 0  ;;  %v949_v51 = vshll.u32 %v1853_v43, %v943_v36  ;;  %v952_v15 = vshll.u32 %v1854_v45, %v943_v36 }
  0xdd   : > { %v561_v63 = vsel %vm559_vm9, %v560_v3, %v556_v6  ;;  %v947_v23 = vshrl.u32 %v1853_v43, %v944_v7  ;;  %v418_v32 = vsel %vm1674_vm10, 0, %v1673_v56  ;;  %v950_v13 = vshrl.u32 %v1854_v45, %v944_v7 }
  0xde   : > { %v562_v12 = vadd.s32 %v561_v63, %v557_v52  ;;  %v419_v18 = vsub.s32 32, %v418_v32  ;;  %v423_v9 = vsub.s32 4294967266, %v418_v32  ;;  %v953_v20 = vshrl.u32 %v1855_v47, %v944_v7  ;;  %v303_v63 = vpop.f32.mrf.mxu3 }
  0xdf   : > { %v955_v39 = vshll.u32 %v1855_v47, %v943_v36  ;;  %v420_v21 = vshll.u32 %v411_v46, %v418_v32  ;;  %v948_v25 = vor.u32 %v947_v23, %v946_v17  ;;  %v956_v22 = vshrl.u32 %v1856_v49, %v944_v7 }
  0xe0   : > { %v563_v24 = vadd.s32 536870912, %v562_v12  ;;  %v421_v26 = vshrl.u32 %v403_v2, %v419_v18  ;;  %v424_v33 = vadd.s32 127, %v423_v9  ;;  %v951_v40 = vor.u32 %v950_v13, %v949_v51 }
  0xe1   : > { %v959_v42 = vshrl.u32 %v1857_v58, %v944_v7  ;;  %v453_v44 = vadd.s32 3, %v436_v8  ;;  %v957_v50 = vor.u32 %v956_v22, %v955_v39  ;;  %v954_v37 = vor.u32 %v953_v20, %v952_v15 }
  0xe2   : > { %v564_v48 = vshrl.u32 %v563_v24, 30  ;;  %v422_v53 = vor.u32 %v421_v26, %v420_v21  ;;  %v425_v54 = vshll.u32 %v424_v33, 23  ;;  %v958_v30 = vshll.u32 %v1856_v49, %v943_v36 }
  0xe3   : > { %vm466_vm11 = vcmp.lt.s32.totalorder %v1976_v16, 0  ;;  %vm961_vm12 = vcmp.lt.s32.totalorder %v2153_v10, 1  ;;  %v978_v38 = vand.u32 65535, %v2156_v11  ;;  %v979_v27 = vshrl.u32 %v2156_v11, 16 }
  0xe4   : > { %v565_v46 = vshll.u32 %v564_v48, 30  ;;  %v426_v35 = vor.u32 4788187, %v425_v54  ;;  %v960_v28 = vor.u32 %v959_v42, %v958_v30  ;;  %vm964_vm13 = vcmp.lt.s32.totalorder %v2153_v10, 4 }
  0xe5   : > { %v969_v55 = vsel %vm961_vm12, %v948_v25, %v951_v40  ;;  %v2174_v57 = vand.u32 3, %v453_v44  ;;  %vm963_vm14 = vcmp.lt.s32.totalorder %v2153_v10, 3  ;;  %v970_v4 = vsel %vm964_vm13, %v957_v50, 920167782 }
  0xe6   : > { %v2176_v59 = vsub.s32 %v562_v12, %v565_v46  ;;  %v427_v5 = vand.u32 2147483647, %v426_v35  ;;  %v429_v1 = vcvt.s32.f32 %v422_v53  ;;  %vm962_vm15 = vcmp.lt.s32.totalorder %v2153_v10, 2 }
  0xe7   : > { %v971_v6 = vsel %vm963_vm14, %v954_v37, %v970_v4  ;;  %v945_v2 = vshrl.u32 %v1852_v41, %v944_v7  ;;  %v588_v3 = vsub.s32 4, %v564_v48  ;;  %v973_v8 = vsel %vm961_vm12, %v951_v40, %v954_v37 }
  0xe8   : > { %vm567_vm0 = vcmp.lt.s32.totalorder %v2176_v59, 0  ;;  %v568_v36 = vsub.s32 0, %v2176_v59  ;;  %v972_v52 = vsel %vm962_vm15, %v969_v55, %v971_v6  ;;  %v430_v56 = vmul.f32 %v429_v1, %v427_v5 }
  0xe9   : > { %v974_v17 = vsel %vm964_vm13, %v960_v28, 1326507024  ;;  %v966_v51 = vsel %vm964_vm13, %v954_v37, 2102212464  ;;  %v1002_v32 = vand.u32 65535, %v972_v52  ;;  %v1003_v18 = vshrl.u32 %v972_v52, 16 }
  0xea   : > { %v569_v23 = vsel %vm567_vm0, %v568_v36, %v2176_v59  ;;  %v975_v7 = vsel %vm963_vm14, %v957_v50, %v974_v17  ;;  %v431_v12 = vxor.u32 2147483648, %v430_v56  ;;  %v558_v9 = vadd.s32 %v2136_v62, %v2134_v61 }
  0xeb   : > { %v570_v13 = vclz %v569_v23  ;;  %v976_v15 = vsel %vm962_vm15, %v973_v8, %v975_v7  ;;  %v2204_v20 = vsel %vm961_vm12, %v945_v2, %v948_v25  ;;  %v2207_v21 = vadd.f32 %v303_v63, %v1986_v31 }
  0xec   : > { %v980_v39 = vand.u32 65535, %v976_v15  ;;  %v432_v24 = vsel %vm311_vm5, %v431_v12, %v430_v56  ;;  %v2213_v26 = vsel %vm466_vm11, %v588_v3, %v564_v48  ;;  %v981_v33 = vshrl.u32 %v976_v15, 16 }
  0xed   : > { %v1676_v22 = vadd.s32 4294967294, %v570_v13  ;;  %v2218_v61 = vsel %vm2142_vm8, %v1974_v14, %v432_v24  ;;  %v2222_v62 = vsel %vm963_vm14, %v951_v40, %v966_v51  ;;  %v1004_v25 = vmul.u32 %v1002_v32, %v978_v38 }
  0xee   : > { %v984_v31 = vmul.u32 %v980_v39, %v979_v27  ;;  %v437_v42 = vmul.f32 %v2218_v61, %v2218_v61  ;;  %v983_v44 = vmul.u32 %v981_v33, %v978_v38  ;;  %v2226_v50 = vmul.u32 %v1003_v18, %v978_v38 }
  0xef   : > { %vm1677_vm1 = vcmp.lt.s32.totalorder %v1676_v22, 0  ;;  %v982_v53 = vmul.u32 %v980_v39, %v978_v38  ;;  %v985_v54 = vmul.u32 %v981_v33, %v979_v27  ;;  %v2228_v37 = vmul.u32 %v1002_v32, %v979_v27 }
  0xf0   : > { %v573_v48 = vsel %vm1677_vm1, 0, %v1676_v22  ;;  %v438_v29 = vmul.f32 -0.001358992, %v437_v42  ;;  %v445_v30 = vmul.f32 -0.00019511016, %v437_v42  ;;  %v988_v35 = vshll.u32 %v984_v31, 16 }
  0xf1   : > { %v574_v46 = vsub.s32 32, %v573_v48  ;;  %v578_v40 = vsub.s32 4294967266, %v573_v48  ;;  %v986_v28 = vshll.u32 %v983_v44, 16  ;;  %v989_v55 = vshrl.u32 %v984_v31, 16 }
  0xf2   : > { %v1007_v4 = vmul.u32 %v1003_v18, %v979_v27  ;;  %v439_v5 = vadd.f32 0.041655596, %v438_v29  ;;  %v446_v1 = vadd.f32 0.008332121, %v445_v30  ;;  %v575_v6 = vshll.u32 %v2176_v59, %v573_v48 }
  0xf3   : > { %v576_v36 = vshrl.u32 %v558_v9, %v574_v46  ;;  %v579_v2 = vadd.s32 127, %v578_v40  ;;  %vm990_vm2 = vc.u32 %v982_v53, %v986_v28  ;;  %v992_v52 = vadd.s32 %v986_v28, %v982_v53 }
  0xf4   : > { %v1008_v38 = vshll.u32 %v2226_v50, 16  ;;  %v440_v56 = vmul.f32 %v439_v5, %v437_v42  ;;  %v447_v3 = vmul.f32 %v446_v1, %v437_v42  ;;  %v991_v17 = vsel %vm990_vm2, 1, %v1851_v0 }
  0xf5   : > { %v577_v8 = vor.u32 %v576_v36, %v575_v6  ;;  %vm2235_vm3 = vcmp.le.f32.partialorder %v464_v19, 0.7853982  ;;  %v580_v27 = vshll.u32 %v579_v2, 23  ;;  %v987_v23 = vshrl.u32 %v983_v44, 16 }
  0xf6   : > { %v993_v59 = vadd.s32 %v991_v17, %v985_v54  ;;  %vm994_vm4 = vc.u32 %v992_v52, %v988_v35  ;;  %v441_v51 = vadd.f32 -0.4999988, %v440_v56  ;;  %v448_v7 = vadd.f32 -0.16666654, %v447_v3 }
  0xf7   : > { %v995_v32 = vsel %vm994_vm4, 1, %v1851_v0  ;;  %v1010_v12 = vshll.u32 %v2228_v37, 16  ;;  %vm456_vm5 = vcmp.eq.s32.totalorder %v2174_v57, 0  ;;  %v581_v13 = vor.u32 4788187, %v580_v27 }
  0xf8   : > { %v997_v15 = vadd.s32 %v995_v32, %v993_v59  ;;  %vm1012_vm6 = vc.u32 %v1004_v25, %v1008_v38  ;;  %v1014_v19 = vadd.s32 %v1008_v38, %v1004_v25  ;;  %v442_v18 = vmul.f32 %v441_v51, %v437_v42 }
  0xf9   : > { %v449_v9 = vmul.f32 %v448_v7, %v437_v42  ;;  %vm455_vm7 = vcmp.lt.s32.totalorder %v2174_v57, 2  ;;  %v584_v39 = vcvt.s32.f32 %v577_v8  ;;  %v1013_v24 = vsel %vm1012_vm6, 1, %v1851_v0 }
  0xfa   : > { %v582_v22 = vand.u32 2147483647, %v581_v13  ;;  %v998_v33 = vadd.s32 %v997_v15, %v987_v23  ;;  %v1015_v31 = vadd.s32 %v1013_v24, %v1007_v4  ;;  %vm1016_vm8 = vc.u32 %v1014_v19, %v1010_v12 }
  0xfb   : > { %v443_v44 = vadd.f32 1.0, %v442_v18  ;;  %v450_v48 = vadd.f32 1.0, %v449_v9  ;;  %v1009_v53 = vshrl.u32 %v2226_v50, 16  ;;  %v1017_v54 = vsel %vm1016_vm8, 1, %v1851_v0 }
  0xfc   : > { %v585_v25 = vmul.f32 %v584_v39, %v582_v22  ;;  %v999_v29 = vadd.s32 %v998_v33, %v989_v55  ;;  %v1019_v42 = vadd.s32 %v1017_v54, %v1015_v31  ;;  %v1084_v30 = vand.u32 2147483647, %v2207_v21 }
  0xfd   : > { %v451_v46 = vmul.f32 %v450_v48, %v2218_v61  ;;  %vm459_vm9 = vcmp.eq.s32.totalorder %v2174_v57, 2  ;;  %v460_v35 = vxor.u32 2147483648, %v443_v44  ;;  %v1087_v40 = vand.u32 2139095040, %v2207_v21 }
  0xfe   : > { %v586_v28 = vxor.u32 2147483648, %v585_v25  ;;  %v1011_v4 = vshrl.u32 %v2228_v37, 16  ;;  %v1018_v50 = vadd.s32 %v1014_v19, %v1010_v12  ;;  %v1020_v5 = vadd.s32 %v1019_v42, %v1009_v53  ;;  %v2280_v12 = vpop.permute.xlu0 %216 }
  0xff   : > { %v457_v1 = vxor.u32 2147483648, %v451_v46  ;;  %v591_v55 = vsel %vm2235_vm3, 0, %v2213_v26  ;;  %v968_v61 = vsel %vm962_vm15, %v2204_v20, %v2222_v62  ;;  %v1088_v6 = vshrl.u32 %v1087_v40, 23 }
 0x100   : > { %v587_v36 = vsel %vm466_vm11, %v586_v28, %v585_v25  ;;  %v1021_v2 = vadd.s32 %v1020_v5, %v1011_v4  ;;  %vm1024_vm10 = vc.u32 %v999_v29, %v1018_v50  ;;  %v1091_v37 = vand.u32 8388607, %v1084_v30 }
 0x101   : > { %v458_v52 = vsel %vm456_vm5, %v443_v44, %v457_v1  ;;  %v461_v26 = vsel %vm459_vm9, %v460_v35, %v451_v46  ;;  %v590_v10 = vsel %vm2235_vm3, %v1976_v16, %v587_v36  ;;  %v1687_v20 = vadd.s32 4294967169, %v1088_v6 }
 0x102   : > { %vm452_vm12 = vweird.f32 %v1974_v14  ;;  %v462_v62 = vsel %vm455_vm7, %v458_v52, %v461_v26  ;;  %v592_v38 = vmul.f32 %v590_v10, %v590_v10  ;;  %v1025_v56 = vadd.s32 1, %v1021_v2  ;;  %v271_v14 = vpop.f32.mrf.mxu0 }
 0x103   : > { %v463_v3 = vsel %vm452_vm12, nan, %v462_v62  ;;  %v608_v8 = vadd.s32 3, %v591_v55  ;;  %v1022_v17 = vmul.u32 %v2156_v11, %v968_v61  ;;  %v1094_v27 = vadd.s32 1, %v1687_v20 }
 0x104   : > { %1549 = vst [vmem:[%s2276_s5] sm:$0xff] %v463_v3  ;;  %v593_v23 = vmul.f32 -0.001358992, %v592_v38  ;;  %v600_v63 = vmul.f32 -0.00019511016, %v592_v38  ;;  %v1026_v59 = vsel %vm1024_vm10, %v1025_v56, %v1021_v2  ;;  %v1092_v51 = vor.u32 8388608, %v1091_v37 }
 0x105   : > { %v1027_v7 = vadd.s32 %v1026_v59, %v1022_v17  ;;  %vm1095_vm11 = vcmp.gt.s32.totalorder %v1094_v27, 0  ;;  %v609_v15 = vand.u32 3, %v608_v8  ;;  %v2283_v18 = vadd.f32 %v271_v14, %v2280_v12 }
 0x106   : > { %v594_v57 = vadd.f32 0.041655596, %v593_v23  ;;  %v601_v32 = vadd.f32 0.008332121, %v600_v63  ;;  %v1096_v13 = vsel %vm1095_vm11, %v1094_v27, 0  ;;  %v2285_v24 = vshll.u32 %v1092_v51, 8 }
 0x107   : > { %v1028_v11 = vadd.s32 536870912, %v1027_v7  ;;  %v1098_v19 = vand.u32 31, %v1096_v13  ;;  %vm611_vm13 = vcmp.eq.s32.totalorder %v609_v15, 0  ;;  %vm614_vm14 = vcmp.eq.s32.totalorder %v609_v15, 2 }
 0x108   : > { %v595_v9 = vmul.f32 %v594_v57, %v592_v38  ;;  %v602_v39 = vmul.f32 %v601_v32, %v592_v38  ;;  %v2289_v48 = vadd.s32 %v1018_v50, %v999_v29  ;;  %v619_v54 = vand.u32 2147483647, %v2283_v18 }
 0x109   : > { %v1029_v22 = vshrl.u32 %v1028_v11, 30  ;;  %v2287_v33 = vsub.s32 32, %v1098_v19  ;;  %v622_v25 = vand.u32 2139095040, %v2283_v18  ;;  %vm610_vm15 = vcmp.lt.s32.totalorder %v609_v15, 2 }
 0x10a   : > { %v596_v31 = vadd.f32 -0.4999988, %v595_v9  ;;  %v603_v44 = vadd.f32 -0.16666654, %v602_v39  ;;  %v2293_v35 = vshrl.u32 %v1096_v13, 5  ;;  %v2296_v40 = vand.u32 65535, %v2285_v24 }
 0x10b   : > { %v1030_v53 = vshll.u32 %v1029_v22, 30  ;;  %vm607_vm0 = vweird.f32 %v1976_v16  ;;  %v1102_v29 = vshrl.u32 %v1853_v43, %v2287_v33  ;;  %v1105_v4 = vshrl.u32 %v1854_v45, %v2287_v33 }
 0x10c   : > { %v597_v42 = vmul.f32 %v596_v31, %v592_v38  ;;  %v604_v46 = vmul.f32 %v603_v44, %v592_v38  ;;  %v2306_v50 = vshrl.u32 %v2285_v24, 16  ;;  %vm931_vm1 = vcmp.lt.s32.totalorder %v1989_v34, 0 }
 0x10d   : > { %v2299_v28 = vsub.s32 %v1027_v7, %v1030_v53  ;;  %v1101_v55 = vshll.u32 %v1852_v41, %v1098_v19  ;;  %v1111_v61 = vshrl.u32 %v1856_v49, %v2287_v33  ;;  %v1104_v36 = vshll.u32 %v1853_v43, %v1098_v19 }
 0x10e   : > { %v598_v5 = vadd.f32 1.0, %v597_v42  ;;  %v605_v1 = vadd.f32 1.0, %v604_v46  ;;  %v1108_v2 = vshrl.u32 %v1855_v47, %v2287_v33  ;;  %v1107_v26 = vshll.u32 %v1854_v45, %v1098_v19 }
 0x10f   : > { %vm1032_vm2 = vcmp.lt.s32.totalorder %v2299_v28, 0  ;;  %v1033_v6 = vsub.s32 0, %v2299_v28  ;;  %v1110_v20 = vshll.u32 %v1855_v47, %v1098_v19  ;;  %v1103_v38 = vor.u32 %v1102_v29, %v1101_v55 }
 0x110   : > { %v606_v37 = vmul.f32 %v605_v1, %v590_v10  ;;  %v615_v52 = vxor.u32 2147483648, %v598_v5  ;;  %v1106_v56 = vor.u32 %v1105_v4, %v1104_v36  ;;  %v1114_v3 = vshrl.u32 %v1857_v58, %v2287_v33 }
 0x111   : > { %v1034_v62 = vsel %vm1032_vm2, %v1033_v6, %v2299_v28  ;;  %vm2324_vm3 = vcmp.le.f32.partialorder %v929_v60, 0.7853982  ;;  %v1112_v27 = vor.u32 %v1111_v61, %v1110_v20  ;;  %v623_v23 = vshrl.u32 %v622_v25, 23 }
 0x112   : > { %v612_v8 = vxor.u32 2147483648, %v606_v37  ;;  %v1035_v10 = vclz %v1034_v62  ;;  %v1053_v63 = vsub.s32 4, %v1029_v22  ;;  %v1109_v59 = vor.u32 %v1108_v2, %v1107_v26 }
 0x113   : > { %v1113_v51 = vshll.u32 %v1856_v49, %v1098_v19  ;;  %v2331_v14 = vand.u32 8388607, %v619_v54  ;;  %v616_v57 = vsel %vm614_vm14, %v615_v52, %v606_v37  ;;  %vm1116_vm4 = vcmp.lt.s32.totalorder %v2293_v35, 1 }
 0x114   : > { %v613_v7 = vsel %vm611_vm13, %v598_v5, %v612_v8  ;;  %v1685_v60 = vadd.s32 4294967294, %v1035_v10  ;;  %vm1119_vm5 = vcmp.lt.s32.totalorder %v2293_v35, 4  ;;  %v1124_v11 = vsel %vm1116_vm4, %v1103_v38, %v1106_v56 }
 0x115   : > { %v617_v32 = vsel %vm610_vm15, %v613_v7, %v616_v57  ;;  %v1115_v13 = vor.u32 %v1114_v3, %v1113_v51  ;;  %vm1118_vm7 = vcmp.lt.s32.totalorder %v2293_v35, 3  ;;  %v1125_v9 = vsel %vm1119_vm5, %v1112_v27, 920167782 }
 0x116   : > { %v618_v19 = vsel %vm607_vm0, nan, %v617_v32  ;;  %vm1686_vm6 = vcmp.lt.s32.totalorder %v1685_v60, 0  ;;  %v2348_v15 = vsel %vm931_vm1, %v1053_v63, %v1029_v22  ;;  %vm1117_vm8 = vcmp.lt.s32.totalorder %v2293_v35, 2 }
 0x117   : > { %1550 = vst [vmem:[%s2276_s5 + $0x8] sm:$0xff] %v618_v19  ;;  %v1038_v39 = vsel %vm1686_vm6, 0, %v1685_v60  ;;  %v1126_v31 = vsel %vm1118_vm7, %v1109_v59, %v1125_v9  ;;  %v1128_v25 = vsel %vm1116_vm4, %v1106_v56, %v1109_v59  ;;  %v1100_v42 = vshrl.u32 %v1852_v41, %v2287_v33 }
 0x118   : > { %v1039_v44 = vsub.s32 32, %v1038_v39  ;;  %v1043_v16 = vsub.s32 4294967266, %v1038_v39  ;;  %v1127_v53 = vsel %vm1117_vm8, %v1124_v11, %v1126_v31  ;;  %v1129_v22 = vsel %vm1119_vm5, %v1115_v13, 1326507024 }
 0x119   : > { %v1157_v46 = vand.u32 65535, %v1127_v53  ;;  %v1158_v29 = vshrl.u32 %v1127_v53, 16  ;;  %v1040_v4 = vshll.u32 %v2299_v28, %v1038_v39  ;;  %v1130_v55 = vsel %vm1118_vm7, %v1112_v27, %v1129_v22 }
 0x11a   : > { %v1041_v5 = vshrl.u32 %v2289_v48, %v1039_v44  ;;  %v1044_v1 = vadd.s32 127, %v1043_v16  ;;  %v1056_v61 = vsel %vm2324_vm3, 0, %v2348_v15  ;;  %v1121_v33 = vsel %vm1119_vm5, %v1109_v59, 2102212464 }
 0x11b   : > { %v1131_v6 = vsel %vm1117_vm8, %v1128_v25, %v1130_v55  ;;  %v1160_v36 = vmul.u32 %v1158_v29, %v2296_v40  ;;  %v1120_v52 = vsel %vm1116_vm4, %v1100_v42, %v1103_v38  ;;  %v1159_v26 = vmul.u32 %v1157_v46, %v2296_v40 }
 0x11c   : > { %v1042_v2 = vor.u32 %v1041_v5, %v1040_v4  ;;  %v1045_v28 = vshll.u32 %v1044_v1, 23  ;;  %v1135_v37 = vand.u32 65535, %v1131_v6  ;;  %v1136_v48 = vshrl.u32 %v1131_v6, 16 }
 0x11d   : > { %v1161_v20 = vmul.u32 %v1157_v46, %v2306_v50  ;;  %v1163_v62 = vshll.u32 %v1160_v36, 16  ;;  %v1122_v8 = vsel %vm1118_vm7, %v1106_v56, %v1121_v33  ;;  %v1678_v27 = vadd.s32 4294967169, %v623_v23 }
 0x11e   : > { %v1046_v3 = vor.u32 4788187, %v1045_v28  ;;  %v1138_v10 = vmul.u32 %v1136_v48, %v2296_v40  ;;  %v1049_v63 = vcvt.s32.f32 %v1042_v2  ;;  %v1139_v59 = vmul.u32 %v1135_v37, %v2306_v50 }
 0x11f   : > { %v1162_v51 = vmul.u32 %v1158_v29, %v2306_v50  ;;  %vm1167_vm9 = vc.u32 %v1159_v26, %v1163_v62  ;;  %v1137_v38 = vmul.u32 %v1135_v37, %v2296_v40  ;;  %v1140_v32 = vmul.u32 %v1136_v48, %v2306_v50 }
 0x120   : > { %v1047_v7 = vand.u32 2147483647, %v1046_v3  ;;  %v1141_v57 = vshll.u32 %v1138_v10, 16  ;;  %v1168_v60 = vsel %vm1167_vm9, 1, %v1851_v0  ;;  %v1165_v13 = vshll.u32 %v1161_v20, 16 }
 0x121   : > { %v1169_v11 = vadd.s32 %v1163_v62, %v1159_v26  ;;  %v1170_v56 = vadd.s32 %v1168_v60, %v1162_v51  ;;  %v1143_v9 = vshll.u32 %v1139_v59, 16  ;;  %v1123_v39 = vsel %vm1117_vm8, %v1120_v52, %v1122_v8 }
 0x122   : > { %v1050_v19 = vmul.f32 %v1049_v63, %v1047_v7  ;;  %vm1145_vm10 = vc.u32 %v1137_v38, %v1141_v57  ;;  %v1147_v23 = vadd.s32 %v1141_v57, %v1137_v38  ;;  %v629_v31 = vadd.s32 1, %v1678_v27 }
 0x123   : > { %v1146_v15 = vsel %vm1145_vm10, 1, %v1851_v0  ;;  %vm1171_vm12 = vc.u32 %v1169_v11, %v1165_v13  ;;  %v1164_v53 = vshrl.u32 %v1160_v36, 16  ;;  %v1142_v22 = vshrl.u32 %v1138_v10, 16 }
 0x124   : > { %v1051_v40 = vxor.u32 2147483648, %v1050_v19  ;;  %v1148_v44 = vadd.s32 %v1146_v15, %v1140_v32  ;;  %vm1149_vm11 = vc.u32 %v1147_v23, %v1143_v9  ;;  %v1172_v16 = vsel %vm1171_vm12, 1, %v1851_v0 }
 0x125   : > { %v1150_v50 = vsel %vm1149_vm11, 1, %v1851_v0  ;;  %v1174_v25 = vadd.s32 %v1172_v16, %v1170_v56  ;;  %vm630_vm13 = vcmp.gt.s32.totalorder %v629_v31, 0  ;;  %v1166_v4 = vshrl.u32 %v1161_v20, 16 }
 0x126   : > { %v1052_v42 = vsel %vm931_vm1, %v1051_v40, %v1050_v19  ;;  %v1152_v35 = vadd.s32 %v1150_v50, %v1148_v44  ;;  %v631_v46 = vsel %vm630_vm13, %v629_v31, 0  ;;  %v1073_v33 = vadd.s32 3, %v1056_v61 }
 0x127   : > { %v1055_v29 = vsel %vm2324_vm3, %v1989_v34, %v1052_v42  ;;  %v1175_v5 = vadd.s32 %v1174_v25, %v1164_v53  ;;  %v633_v1 = vand.u32 31, %v631_v46  ;;  %v1144_v6 = vshrl.u32 %v1139_v59, 16 }
 0x128   : > { %v1057_v55 = vmul.f32 %v1055_v29, %v1055_v29  ;;  %v1153_v2 = vadd.s32 %v1152_v35, %v1142_v22  ;;  %v1177_v28 = vmul.u32 %v2285_v24, %v1123_v39  ;;  %v627_v37 = vor.u32 8388608, %v2331_v14 }
 0x129   : > { %v1176_v36 = vadd.s32 %v1175_v5, %v1166_v4  ;;  %v2397_v48 = vsub.s32 32, %v633_v1  ;;  %v2401_v17 = vadd.s32 %v1169_v11, %v1165_v13  ;;  %v2403_v3 = vshrl.u32 %v631_v46, 5 }
 0x12a   : > { %v1058_v52 = vmul.f32 -0.001358992, %v1057_v55  ;;  %v1065_v26 = vmul.f32 -0.00019511016, %v1057_v55  ;;  %v2399_v62 = vadd.s32 %v1153_v2, %v1144_v6  ;;  %v636_v61 = vshll.u32 %v1852_v41, %v633_v1 }
 0x12b   : > { %v1180_v20 = vadd.s32 1, %v1176_v36  ;;  %v637_v8 = vshrl.u32 %v1853_v43, %v2397_v48  ;;  %v640_v14 = vshrl.u32 %v1854_v45, %v2397_v48  ;;  %v639_v63 = vshll.u32 %v1853_v43, %v633_v1 }
 0x12c   : > { %v1059_v10 = vadd.f32 0.041655596, %v1058_v52  ;;  %v1066_v24 = vadd.f32 0.008332121, %v1065_v26  ;;  %vm1179_vm14 = vc.u32 %v2399_v62, %v2401_v17  ;;  %v642_v59 = vshll.u32 %v1854_v45, %v633_v1 }
 0x12d   : > { %v1181_v27 = vsel %vm1179_vm14, %v1180_v20, %v1176_v36  ;;  %v643_v51 = vshrl.u32 %v1855_v47, %v2397_v48  ;;  %v638_v60 = vor.u32 %v637_v8, %v636_v61  ;;  %v645_v32 = vshll.u32 %v1855_v47, %v633_v1 }
 0x12e   : > { %v1060_v7 = vmul.f32 %v1059_v10, %v1057_v55  ;;  %v1067_v38 = vmul.f32 %v1066_v24, %v1057_v55  ;;  %v1182_v57 = vadd.s32 %v1181_v27, %v1177_v28  ;;  %v646_v13 = vshrl.u32 %v1856_v49, %v2397_v48 }
 0x12f   : > { %v648_v11 = vshll.u32 %v1856_v49, %v633_v1  ;;  %v649_v56 = vshrl.u32 %v1857_v58, %v2397_v48  ;;  %v2422_v39 = vor.u32 %v640_v14, %v639_v63  ;;  %v1074_v15 = vand.u32 3, %v1073_v33 }
 0x130   : > { %v1061_v19 = vadd.f32 -0.4999988, %v1060_v7  ;;  %v1068_v9 = vadd.f32 -0.16666654, %v1067_v38  ;;  %v1183_v23 = vadd.s32 536870912, %v1182_v57  ;;  %v644_v31 = vor.u32 %v643_v51, %v642_v59 }
 0x131   : > { %v647_v40 = vor.u32 %v646_v13, %v645_v32  ;;  %v650_v44 = vor.u32 %v649_v56, %v648_v11  ;;  %vm654_vm15 = vcmp.lt.s32.totalorder %v2403_v3, 4  ;;  %vm1072_vm0 = vweird.f32 %v1989_v34 }
 0x132   : > { %v1062_v16 = vmul.f32 %v1061_v19, %v1057_v55  ;;  %v1069_v50 = vmul.f32 %v1068_v9, %v1057_v55  ;;  %v2424_v53 = vshrl.u32 %v1183_v23, 30  ;;  %vm651_vm1 = vcmp.lt.s32.totalorder %v2403_v3, 1 }
 0x133   : > { %vm653_vm2 = vcmp.lt.s32.totalorder %v2403_v3, 3  ;;  %v660_v25 = vsel %vm654_vm15, %v647_v40, 920167782  ;;  %v2432_v42 = vshll.u32 %v627_v37, 8  ;;  %v659_v4 = vsel %vm651_vm1, %v638_v60, %v2422_v39 }
 0x134   : > { %v1063_v22 = vadd.f32 1.0, %v1062_v16  ;;  %v1070_v35 = vadd.f32 1.0, %v1069_v50  ;;  %v1185_v46 = vshll.u32 %v2424_v53, 30  ;;  %vm1075_vm3 = vcmp.lt.s32.totalorder %v1074_v15, 2 }
 0x135   : > { %vm652_vm4 = vcmp.lt.s32.totalorder %v2403_v3, 2  ;;  %v661_v5 = vsel %vm653_vm2, %v644_v31, %v660_v25  ;;  %v664_v1 = vsel %vm654_vm15, %v650_v44, 1326507024  ;;  %v663_v2 = vsel %vm651_vm1, %v2422_v39, %v644_v31 }
 0x136   : > { %v1071_v55 = vmul.f32 %v1070_v35, %v1055_v29  ;;  %v1080_v33 = vxor.u32 2147483648, %v1063_v22  ;;  %v1186_v6 = vsub.s32 %v1182_v57, %v1185_v46  ;;  %vm1076_vm5 = vcmp.eq.s32.totalorder %v1074_v15, 0 }
 0x137   : > { %vm1079_vm6 = vcmp.eq.s32.totalorder %v1074_v15, 2  ;;  %v662_v36 = vsel %vm652_vm4, %v659_v4, %v661_v5  ;;  %v665_v28 = vsel %vm653_vm2, %v647_v40, %v664_v1  ;;  %v668_v26 = vand.u32 65535, %v2432_v42 }
 0x138   : > { %v1077_v37 = vxor.u32 2147483648, %v1071_v55  ;;  %vm1187_vm7 = vcmp.lt.s32.totalorder %v1186_v6, 0  ;;  %v1188_v52 = vsub.s32 0, %v1186_v6  ;;  %v1081_v29 = vsel %vm1079_vm6, %v1080_v33, %v1071_v55 }
 0x139   : > { %v666_v20 = vsel %vm652_vm4, %v663_v2, %v665_v28  ;;  %v669_v61 = vshrl.u32 %v2432_v42, 16  ;;  %v692_v8 = vand.u32 65535, %v662_v36  ;;  %v635_v51 = vshrl.u32 %v1852_v41, %v2397_v48 }
 0x13a   : > { %v1078_v10 = vsel %vm1076_vm5, %v1063_v22, %v1077_v37  ;;  %v1189_v24 = vsel %vm1187_vm7, %v1188_v52, %v1186_v6  ;;  %v670_v14 = vand.u32 65535, %v666_v20  ;;  %v671_v27 = vshrl.u32 %v666_v20, 16 }
 0x13b   : > { %v1082_v63 = vsel %vm1075_vm3, %v1078_v10, %v1081_v29  ;;  %v1190_v59 = vclz %v1189_v24  ;;  %v693_v7 = vshrl.u32 %v662_v36, 16  ;;  %v1178_v13 = vadd.s32 %v2401_v17, %v2399_v62  ;;  %v300_v36 = vpop.f32.mrf.mxu1  ;;  %v277_v29 = vpop.f32.mrf.mxu2 }
 0x13c   : > { %v1083_v38 = vsel %vm1072_vm0, nan, %v1082_v63  ;;  %v673_v57 = vmul.u32 %v671_v27, %v668_v26  ;;  %v674_v32 = vmul.u32 %v670_v14, %v669_v61  ;;  %v655_v56 = vsel %vm651_vm1, %v635_v51, %v638_v60 }
 0x13d   : > { %1553 = vst [vmem:[%s2276_s5 + $0x20] sm:$0xff] %v1083_v38  ;;  %v1688_v11 = vadd.s32 4294967294, %v1190_v59  ;;  %v656_v19 = vsel %vm654_vm15, %v644_v31, 2102212464  ;;  %v672_v9 = vmul.u32 %v670_v14, %v668_v26  ;;  %v694_v48 = vmul.u32 %v692_v8, %v668_v26 }
 0x13e   : > { %v676_v23 = vshll.u32 %v673_v57, 16  ;;  %v675_v15 = vmul.u32 %v671_v27, %v669_v61  ;;  %v678_v34 = vshll.u32 %v674_v32, 16  ;;  %v695_v40 = vmul.u32 %v693_v7, %v668_v26 }
 0x13f   : > { %vm1689_vm8 = vcmp.lt.s32.totalorder %v1688_v11, 0  ;;  %v696_v50 = vmul.u32 %v692_v8, %v669_v61  ;;  %vm1086_vm10 = vcmp.lt.s32.totalorder %v2207_v21, 0  ;;  %v677_v25 = vshrl.u32 %v673_v57, 16  ;;  %v2474_v8 = vpop.permute.xlu1 %226 }
 0x140   : > { %v1193_v44 = vsel %vm1689_vm8, 0, %v1688_v11  ;;  %vm680_vm9 = vc.u32 %v672_v9, %v676_v23  ;;  %v682_v16 = vadd.s32 %v676_v23, %v672_v9  ;;  %v697_v31 = vmul.u32 %v693_v7, %v669_v61 }
 0x141   : > { %v1194_v62 = vsub.s32 32, %v1193_v44  ;;  %v1198_v17 = vsub.s32 4294967266, %v1193_v44  ;;  %v681_v60 = vsel %vm680_vm9, 1, %v1851_v0  ;;  %v698_v35 = vshll.u32 %v695_v40, 16 }
 0x142   : > { %v683_v22 = vadd.s32 %v681_v60, %v675_v15  ;;  %vm684_vm12 = vc.u32 %v682_v16, %v678_v34  ;;  %v1195_v46 = vshll.u32 %v1186_v6, %v1193_v44  ;;  %v700_v33 = vshll.u32 %v696_v50, 16 }
 0x143   : > { %v1196_v4 = vshrl.u32 %v1178_v13, %v1194_v62  ;;  %v1199_v5 = vadd.s32 127, %v1198_v17  ;;  %v685_v1 = vsel %vm684_vm12, 1, %v1851_v0  ;;  %vm702_vm11 = vc.u32 %v694_v48, %v698_v35 }
 0x144   : > { %v687_v55 = vadd.s32 %v685_v1, %v683_v22  ;;  %v704_v2 = vadd.s32 %v698_v35, %v694_v48  ;;  %v1208_v52 = vsub.s32 4, %v2424_v53  ;;  %v703_v26 = vsel %vm702_vm11, 1, %v1851_v0 }
 0x145   : > { %v1197_v28 = vor.u32 %v1196_v4, %v1195_v46  ;;  %v1200_v37 = vshll.u32 %v1199_v5, 23  ;;  %v657_v6 = vsel %vm653_vm2, %v2422_v39, %v656_v19  ;;  %v705_v61 = vadd.s32 %v703_v26, %v697_v31 }
 0x146   : > { %v688_v20 = vadd.s32 %v687_v55, %v677_v25  ;;  %vm706_vm13 = vc.u32 %v704_v2, %v700_v33  ;;  %v679_v24 = vshrl.u32 %v674_v32, 16  ;;  %v2478_v27 = vadd.f32 %v300_v36, %v2280_v12 }
 0x147   : > { %v1201_v10 = vor.u32 4788187, %v1200_v37  ;;  %v707_v14 = vsel %vm706_vm13, 1, %v1851_v0  ;;  %v1204_v63 = vcvt.s32.f32 %v1197_v28  ;;  %v699_v59 = vshrl.u32 %v695_v40, 16 }
 0x148   : > { %v709_v51 = vadd.s32 %v707_v14, %v705_v61  ;;  %v2481_v7 = vadd.f32 %v277_v29, %v2474_v8  ;;  %v689_v39 = vadd.s32 %v688_v20, %v679_v24  ;;  %v774_v57 = vand.u32 2147483647, %v2478_v27 }
 0x149   : > { %v1202_v38 = vand.u32 2147483647, %v1201_v10  ;;  %v777_v13 = vand.u32 2139095040, %v2478_v27  ;;  %v1209_v32 = vsel %vm1086_vm10, %v1208_v52, %v2424_v53  ;;  %v701_v11 = vshrl.u32 %v696_v50, 16 }
 0x14a   : > { %v710_v19 = vadd.s32 %v709_v51, %v699_v59  ;;  %v708_v9 = vadd.s32 %v704_v2, %v700_v33  ;;  %v781_v48 = vand.u32 8388607, %v774_v57  ;;  %vm1085_vm14 = vcmp.le.f32.partialorder %v1084_v30, 0.7853982 }
 0x14b   : > { %v1205_v12 = vmul.f32 %v1204_v63, %v1202_v38  ;;  %v778_v23 = vshrl.u32 %v777_v13, 23  ;;  %v658_v15 = vsel %vm652_vm4, %v655_v56, %v657_v6  ;;  %v1242_v40 = vand.u32 2139095040, %v2481_v7 }
 0x14c   : > { %v711_v34 = vadd.s32 %v710_v19, %v701_v11  ;;  %v1211_v16 = vsel %vm1085_vm14, 0, %v1209_v32  ;;  %vm714_vm15 = vc.u32 %v689_v39, %v708_v9  ;;  %v782_v62 = vor.u32 8388608, %v781_v48 }
 0x14d   : > { %v1206_v44 = vxor.u32 2147483648, %v1205_v12  ;;  %v1681_v53 = vadd.s32 4294967169, %v778_v23  ;;  %v712_v25 = vmul.u32 %v2432_v42, %v658_v15  ;;  %v1228_v22 = vadd.s32 3, %v1211_v16 }
 0x14e   : > { %v715_v50 = vadd.s32 1, %v711_v34  ;;  %v1243_v56 = vshrl.u32 %v1242_v40, 23  ;;  %v2499_v4 = vshll.u32 %v782_v62, 8  ;;  %v2503_v52 = vadd.s32 %v708_v9, %v689_v39 }
 0x14f   : > { %v1207_v17 = vsel %vm1086_vm10, %v1206_v44, %v1205_v12  ;;  %v784_v60 = vadd.s32 1, %v1681_v53  ;;  %v2501_v33 = vand.u32 3, %v1228_v22  ;;  %v1239_v6 = vand.u32 2147483647, %v2481_v7 }
 0x150   : > { %v1210_v30 = vsel %vm1085_vm14, %v2207_v21, %v1207_v17  ;;  %v716_v3 = vsel %vm714_vm15, %v715_v50, %v711_v34  ;;  %v1690_v36 = vadd.s32 4294967169, %v1243_v56  ;;  %v2506_v29 = vand.u32 65535, %v2499_v4 }
 0x151   : > { %v1212_v31 = vmul.f32 %v1210_v30, %v1210_v30  ;;  %v717_v35 = vadd.s32 %v716_v3, %v712_v25  ;;  %vm785_vm0 = vcmp.gt.s32.totalorder %v784_v60, 0  ;;  %vm621_vm1 = vcmp.lt.s32.totalorder %v2283_v18, 0 }
 0x152   : > { %v786_v46 = vsel %vm785_vm0, %v784_v60, 0  ;;  %v2511_v24 = vshrl.u32 %v2499_v4, 16  ;;  %vm1234_vm2 = vcmp.eq.s32.totalorder %v2501_v33, 2  ;;  %v2518_v51 = vadd.s32 1, %v1690_v36 }
 0x153   : > { %v1213_v5 = vmul.f32 -0.001358992, %v1212_v31  ;;  %v1220_v1 = vmul.f32 -0.00019511016, %v1212_v31  ;;  %v718_v55 = vadd.s32 536870912, %v717_v35  ;;  %v788_v2 = vand.u32 31, %v786_v46 }
 0x154   : > { %v2514_v14 = vshrl.u32 %v786_v46, 5  ;;  %vm1231_vm3 = vcmp.eq.s32.totalorder %v2501_v33, 0  ;;  %vm1230_vm4 = vcmp.lt.s32.totalorder %v2501_v33, 2  ;;  %vm1227_vm6 = vweird.f32 %v2207_v21 }
 0x155   : > { %v1214_v42 = vadd.f32 0.041655596, %v1213_v5  ;;  %v1221_v28 = vadd.f32 0.008332121, %v1220_v1  ;;  %v719_v37 = vshrl.u32 %v718_v55, 30  ;;  %v789_v26 = vsub.s32 32, %v788_v2 }
 0x156   : > { %v791_v32 = vshll.u32 %v1852_v41, %v788_v2  ;;  %v794_v19 = vshll.u32 %v1853_v43, %v788_v2  ;;  %v797_v12 = vshll.u32 %v1854_v45, %v788_v2  ;;  %v800_v44 = vshll.u32 %v1855_v47, %v788_v2 }
 0x157   : > { %v1215_v20 = vmul.f32 %v1214_v42, %v1212_v31  ;;  %v1222_v61 = vmul.f32 %v1221_v28, %v1212_v31  ;;  %v720_v10 = vshll.u32 %v719_v37, 30  ;;  %v792_v63 = vshrl.u32 %v1853_v43, %v789_v26 }
 0x158   : > { %v795_v59 = vshrl.u32 %v1854_v45, %v789_v26  ;;  %v743_v11 = vsub.s32 4, %v719_v37  ;;  %v798_v9 = vshrl.u32 %v1855_v47, %v789_v26  ;;  %v801_v16 = vshrl.u32 %v1856_v49, %v789_v26 }
 0x159   : > { %v1216_v38 = vadd.f32 -0.4999988, %v1215_v20  ;;  %v1223_v39 = vadd.f32 -0.16666654, %v1222_v61  ;;  %v2520_v13 = vsub.s32 %v717_v35, %v720_v10  ;;  %v793_v34 = vor.u32 %v792_v63, %v791_v32 }
 0x15a   : > { %v796_v40 = vor.u32 %v795_v59, %v794_v19  ;;  %v804_v17 = vshrl.u32 %v1857_v58, %v789_v26  ;;  %vm2537_vm7 = vcmp.le.f32.partialorder %v619_v54, 0.7853982  ;;  %v799_v22 = vor.u32 %v798_v9, %v797_v12 }
 0x15b   : > { %v1217_v23 = vmul.f32 %v1216_v38, %v1212_v31  ;;  %v1224_v48 = vmul.f32 %v1223_v39, %v1212_v31  ;;  %vm722_vm5 = vcmp.lt.s32.totalorder %v2520_v13, 0  ;;  %v723_v15 = vsub.s32 0, %v2520_v13 }
 0x15c   : > { %v802_v3 = vor.u32 %v801_v16, %v800_v44  ;;  %v803_v56 = vshll.u32 %v1856_v49, %v788_v2  ;;  %v790_v46 = vshrl.u32 %v1852_v41, %v789_v26  ;;  %vm806_vm8 = vcmp.lt.s32.totalorder %v2514_v14, 1 }
 0x15d   : > { %v1218_v53 = vadd.f32 1.0, %v1217_v23  ;;  %v1225_v50 = vadd.f32 1.0, %v1224_v48  ;;  %v724_v62 = vsel %vm722_vm5, %v723_v15, %v2520_v13  ;;  %v744_v1 = vsel %vm621_vm1, %v743_v11, %v719_v37 }
 0x15e   : > { %v725_v60 = vclz %v724_v62  ;;  %v805_v55 = vor.u32 %v804_v17, %v803_v56  ;;  %vm807_vm9 = vcmp.lt.s32.totalorder %v2514_v14, 2  ;;  %vm808_vm10 = vcmp.lt.s32.totalorder %v2514_v14, 3 }
 0x15f   : > { %v1226_v31 = vmul.f32 %v1225_v50, %v1210_v30  ;;  %v1235_v35 = vxor.u32 2147483648, %v1218_v53  ;;  %vm809_vm12 = vcmp.lt.s32.totalorder %v2514_v14, 4  ;;  %v814_v2 = vsel %vm806_vm8, %v793_v34, %v796_v40 }
 0x160   : > { %v1679_v5 = vadd.s32 4294967294, %v725_v60  ;;  %v811_v30 = vsel %vm809_vm12, %v799_v22, 2102212464  ;;  %v815_v42 = vsel %vm809_vm12, %v802_v3, 920167782  ;;  %v810_v26 = vsel %vm806_vm8, %v790_v46, %v793_v34 }
 0x161   : > { %v1232_v54 = vxor.u32 2147483648, %v1226_v31  ;;  %v1236_v36 = vsel %vm1234_vm2, %v1235_v35, %v1226_v31  ;;  %v816_v20 = vsel %vm808_vm10, %v799_v22, %v815_v42  ;;  %v812_v59 = vsel %vm808_vm10, %v796_v40, %v811_v30 }
 0x162   : > { %vm1680_vm11 = vcmp.lt.s32.totalorder %v1679_v5, 0  ;;  %v817_v32 = vsel %vm807_vm9, %v814_v2, %v816_v20  ;;  %v818_v11 = vsel %vm806_vm8, %v796_v40, %v799_v22  ;;  %v819_v12 = vsel %vm809_vm12, %v805_v55, 1326507024 }
 0x163   : > { %v1233_v28 = vsel %vm1231_vm3, %v1218_v53, %v1232_v54  ;;  %v728_v37 = vsel %vm1680_vm11, 0, %v1679_v5  ;;  %v847_v9 = vand.u32 65535, %v817_v32  ;;  %v746_v21 = vsel %vm2537_vm7, 0, %v744_v1 }
 0x164   : > { %v1237_v61 = vsel %vm1230_vm4, %v1233_v28, %v1236_v36  ;;  %v729_v10 = vsub.s32 32, %v728_v37  ;;  %v733_v63 = vsub.s32 4294967266, %v728_v37  ;;  %v730_v39 = vshll.u32 %v2520_v13, %v728_v37 }
 0x165   : > { %v1238_v38 = vsel %vm1227_vm6, nan, %v1237_v61  ;;  %v2582_v13 = vsel %vm807_vm9, %v810_v26, %v812_v59  ;;  %v820_v23 = vsel %vm808_vm10, %v802_v3, %v819_v12  ;;  %v848_v48 = vshrl.u32 %v817_v32, 16 }
 0x166   : > { %1554 = vst [vmem:[%s2276_s5 + $0x28] sm:$0xff] %v1238_v38  ;;  %v731_v33 = vshrl.u32 %v2503_v52, %v729_v10  ;;  %v734_v19 = vadd.s32 127, %v733_v63  ;;  %v821_v52 = vsel %vm807_vm9, %v818_v11, %v820_v23  ;;  %vm1250_vm13 = vcmp.gt.s32.totalorder %v2518_v51, 0 }
 0x167   : > { %v825_v40 = vand.u32 65535, %v821_v52  ;;  %v826_v44 = vshrl.u32 %v821_v52, 16  ;;  %v850_v16 = vmul.u32 %v848_v48, %v2506_v29  ;;  %v851_v53 = vmul.u32 %v847_v9, %v2511_v24 }
 0x168   : > { %v732_v15 = vor.u32 %v731_v33, %v730_v39  ;;  %v735_v34 = vshll.u32 %v734_v19, 23  ;;  %v2591_v62 = vadd.s32 3, %v746_v21  ;;  %v867_v17 = vmul.u32 %v2499_v4, %v2582_v13 }
 0x169   : > { %v2597_v60 = vand.u32 8388607, %v1239_v6  ;;  %v828_v14 = vmul.u32 %v826_v44, %v2506_v29  ;;  %v829_v22 = vmul.u32 %v825_v40, %v2511_v24  ;;  %v849_v3 = vmul.u32 %v847_v9, %v2506_v29 }
 0x16a   : > { %v736_v50 = vor.u32 4788187, %v735_v34  ;;  %v1251_v56 = vsel %vm1250_vm13, %v2518_v51, 0  ;;  %v739_v35 = vcvt.s32.f32 %v732_v15  ;;  %v852_v46 = vmul.u32 %v848_v48, %v2511_v24 }
 0x16b   : > { %v853_v5 = vshll.u32 %v850_v16, 16  ;;  %v827_v1 = vmul.u32 %v825_v40, %v2506_v29  ;;  %v830_v55 = vmul.u32 %v826_v44, %v2511_v24  ;;  %v831_v54 = vshll.u32 %v828_v14, 16 }
 0x16c   : > { %v737_v31 = vand.u32 2147483647, %v736_v50  ;;  %v855_v36 = vshll.u32 %v851_v53, 16  ;;  %v833_v2 = vshll.u32 %v829_v22, 16  ;;  %v1253_v51 = vand.u32 31, %v1251_v56 }
 0x16d   : > { %vm857_vm14 = vc.u32 %v849_v3, %v853_v5  ;;  %v859_v42 = vadd.s32 %v853_v5, %v849_v3  ;;  %vm835_vm15 = vc.u32 %v827_v1, %v831_v54  ;;  %v837_v28 = vadd.s32 %v831_v54, %v827_v1 }
 0x16e   : > { %v740_v30 = vmul.f32 %v739_v35, %v737_v31  ;;  %v858_v37 = vsel %vm857_vm14, 1, %v1851_v0  ;;  %v836_v20 = vsel %vm835_vm15, 1, %v1851_v0  ;;  %v854_v29 = vshrl.u32 %v850_v16, 16 }
 0x16f   : > { %v860_v61 = vadd.s32 %v858_v37, %v852_v46  ;;  %vm861_vm0 = vc.u32 %v859_v42, %v855_v36  ;;  %v838_v10 = vadd.s32 %v836_v20, %v830_v55  ;;  %vm839_vm2 = vc.u32 %v837_v28, %v833_v2 }
 0x170   : > { %v741_v26 = vxor.u32 2147483648, %v740_v30  ;;  %v862_v24 = vsel %vm861_vm0, 1, %v1851_v0  ;;  %v840_v59 = vsel %vm839_vm2, 1, %v1851_v0  ;;  %v2612_v39 = vsub.s32 32, %v1253_v51 }
 0x171   : > { %v864_v38 = vadd.s32 %v862_v24, %v860_v61  ;;  %v832_v11 = vshrl.u32 %v828_v14, 16  ;;  %v842_v33 = vadd.s32 %v840_v59, %v838_v10  ;;  %v2617_v19 = vshrl.u32 %v1251_v56, 5 }
 0x172   : > { %v742_v63 = vsel %vm621_vm1, %v741_v26, %v740_v30  ;;  %v834_v9 = vshrl.u32 %v829_v22, 16  ;;  %v856_v21 = vshrl.u32 %v851_v53, 16  ;;  %v2619_v15 = vadd.s32 %v859_v42, %v855_v36 }
 0x173   : > { %v745_v32 = vsel %vm2537_vm7, %v2283_v18, %v742_v63  ;;  %v865_v23 = vadd.s32 %v864_v38, %v854_v29  ;;  %v843_v48 = vadd.s32 %v842_v33, %v832_v11  ;;  %v1256_v34 = vshll.u32 %v1852_v41, %v1253_v51 }
 0x174   : > { %v747_v12 = vmul.f32 %v745_v32, %v745_v32  ;;  %v1259_v52 = vshll.u32 %v1853_v43, %v1253_v51  ;;  %v1257_v25 = vshrl.u32 %v1853_v43, %v2612_v39  ;;  %v1260_v14 = vshrl.u32 %v1854_v45, %v2612_v39 }
 0x175   : > { %v866_v16 = vadd.s32 %v865_v23, %v856_v21  ;;  %v2625_v50 = vadd.s32 %v843_v48, %v834_v9  ;;  %v1263_v53 = vshrl.u32 %v1855_v47, %v2612_v39  ;;  %v1265_v22 = vshll.u32 %v1855_v47, %v1253_v51 }
 0x176   : > { %v748_v40 = vmul.f32 -0.001358992, %v747_v12  ;;  %v755_v44 = vmul.f32 -0.00019511016, %v747_v12  ;;  %v1266_v35 = vshrl.u32 %v1856_v49, %v2612_v39  ;;  %v1262_v46 = vshll.u32 %v1854_v45, %v1253_v51 }
 0x177   : > { %v870_v31 = vadd.s32 1, %v866_v16  ;;  %vm869_vm1 = vc.u32 %v2625_v50, %v2619_v15  ;;  %v1268_v5 = vshll.u32 %v1856_v49, %v1253_v51  ;;  %v1269_v1 = vshrl.u32 %v1857_v58, %v2612_v39 }
 0x178   : > { %v749_v3 = vadd.f32 0.041655596, %v748_v40  ;;  %v756_v56 = vadd.f32 0.008332121, %v755_v44  ;;  %v1267_v30 = vor.u32 %v1266_v35, %v1265_v22  ;;  %v2643_v42 = vor.u32 %v1257_v25, %v1256_v34 }
 0x179   : > { %v871_v36 = vsel %vm869_vm1, %v870_v31, %v866_v16  ;;  %v2645_v28 = vor.u32 %v1260_v14, %v1259_v52  ;;  %v2647_v37 = vor.u32 %v1263_v53, %v1262_v46  ;;  %v1270_v51 = vor.u32 %v1269_v1, %v1268_v5 }
 0x17a   : > { %v750_v55 = vmul.f32 %v749_v3, %v747_v12  ;;  %v757_v54 = vmul.f32 %v756_v56, %v747_v12  ;;  %v872_v2 = vadd.s32 %v871_v36, %v867_v17  ;;  %v764_v61 = vand.u32 3, %v2591_v62 }
 0x17b   : > { %v1247_v29 = vor.u32 8388608, %v2597_v60  ;;  %vm1274_vm3 = vcmp.lt.s32.totalorder %v2617_v19, 4  ;;  %vm1271_vm4 = vcmp.lt.s32.totalorder %v2617_v19, 1  ;;  %vm1273_vm5 = vcmp.lt.s32.totalorder %v2617_v19, 3 }
 0x17c   : > { %v751_v26 = vadd.f32 -0.4999988, %v750_v55  ;;  %v758_v20 = vadd.f32 -0.16666654, %v757_v54  ;;  %v873_v10 = vadd.s32 536870912, %v872_v2  ;;  %v1279_v62 = vsel %vm1271_vm4, %v2643_v42, %v2645_v28 }
 0x17d   : > { %v1280_v4 = vsel %vm1274_vm3, %v1267_v30, 920167782  ;;  %v1283_v17 = vsel %vm1271_vm4, %v2645_v28, %v2647_v37  ;;  %v1284_v11 = vsel %vm1274_vm3, %v1270_v51, 1326507024  ;;  %vm1272_vm6 = vcmp.lt.s32.totalorder %v2617_v19, 2 }
 0x17e   : > { %v752_v24 = vmul.f32 %v751_v26, %v747_v12  ;;  %v759_v63 = vmul.f32 %v758_v20, %v747_v12  ;;  %v2655_v13 = vshrl.u32 %v873_v10, 30  ;;  %v1281_v38 = vsel %vm1273_vm5, %v2647_v37, %v1280_v4 }
 0x17f   : > { %v1285_v12 = vsel %vm1273_vm5, %v1267_v30, %v1284_v11  ;;  %v2675_v9 = vshll.u32 %v1247_v29, 8  ;;  %vm762_vm7 = vweird.f32 %v2283_v18  ;;  %vm765_vm8 = vcmp.lt.s32.totalorder %v764_v61, 2 }
 0x180   : > { %v753_v60 = vadd.f32 1.0, %v752_v24  ;;  %v760_v59 = vadd.f32 1.0, %v759_v63  ;;  %v875_v33 = vshll.u32 %v2655_v13, 30  ;;  %v1286_v48 = vsel %vm1272_vm6, %v1283_v17, %v1285_v12 }
 0x181   : > { %vm766_vm9 = vcmp.eq.s32.totalorder %v764_v61, 0  ;;  %v1282_v52 = vsel %vm1272_vm6, %v1279_v62, %v1281_v38  ;;  %vm769_vm10 = vcmp.eq.s32.totalorder %v764_v61, 2  ;;  %v1289_v44 = vshrl.u32 %v2675_v9, 16  ;;  %v306_v38 = vpop.f32.mrf.mxu3 }
 0x182   : > { %v761_v21 = vmul.f32 %v760_v59, %v745_v32  ;;  %v770_v23 = vxor.u32 2147483648, %v753_v60  ;;  %v876_v34 = vsub.s32 %v872_v2, %v875_v33  ;;  %v1290_v16 = vand.u32 65535, %v1286_v48 }
 0x183   : > { %v1288_v25 = vand.u32 65535, %v2675_v9  ;;  %v1291_v14 = vshrl.u32 %v1286_v48, 16  ;;  %v1312_v56 = vand.u32 65535, %v1282_v52  ;;  %v1313_v5 = vshrl.u32 %v1282_v52, 16 }
 0x184   : > { %v767_v40 = vxor.u32 2147483648, %v761_v21  ;;  %vm877_vm12 = vcmp.lt.s32.totalorder %v876_v34, 0  ;;  %v878_v32 = vsub.s32 0, %v876_v34  ;;  %v771_v22 = vsel %vm769_vm10, %v770_v23, %v761_v21 }
 0x185   : > { %v1294_v3 = vmul.u32 %v1290_v16, %v1289_v44  ;;  %v1293_v46 = vmul.u32 %v1291_v14, %v1288_v25  ;;  %v1292_v54 = vmul.u32 %v1290_v16, %v1288_v25  ;;  %v1255_v2 = vshrl.u32 %v1852_v41, %v2612_v39 }
 0x186   : > { %v768_v53 = vsel %vm766_vm9, %v753_v60, %v767_v40  ;;  %v879_v35 = vsel %vm877_vm12, %v878_v32, %v876_v34  ;;  %v1295_v26 = vmul.u32 %v1291_v14, %v1289_v44  ;;  %v1315_v61 = vmul.u32 %v1313_v5, %v1288_v25 }
 0x187   : > { %v772_v31 = vsel %vm765_vm8, %v768_v53, %v771_v22  ;;  %v880_v55 = vclz %v879_v35  ;;  %v1296_v36 = vshll.u32 %v1293_v46, 16  ;;  %v1298_v20 = vshll.u32 %v1294_v3, 16 }
 0x188   : > { %v773_v1 = vsel %vm762_vm7, nan, %v772_v31  ;;  %v1316_v10 = vmul.u32 %v1312_v56, %v1289_v44  ;;  %v868_v29 = vadd.s32 %v2619_v15, %v2625_v50  ;;  %v1297_v18 = vshrl.u32 %v1293_v46, 16 }
 0x189   : > { %1551 = vst [vmem:[%s2276_s5 + $0x10] sm:$0xff] %v773_v1  ;;  %v1682_v30 = vadd.s32 4294967294, %v880_v55  ;;  %vm1300_vm11 = vc.u32 %v1292_v54, %v1296_v36  ;;  %v1302_v51 = vadd.s32 %v1296_v36, %v1292_v54  ;;  %v1318_v62 = vshll.u32 %v1315_v61, 16 }
 0x18a   : > { %v1301_v24 = vsel %vm1300_vm11, 1, %v1851_v0  ;;  %v1314_v59 = vmul.u32 %v1312_v56, %v1288_v25  ;;  %v1317_v12 = vmul.u32 %v1313_v5, %v1289_v44  ;;  %v1320_v21 = vshll.u32 %v1316_v10, 16 }
 0x18b   : > { %vm1683_vm13 = vcmp.lt.s32.totalorder %v1682_v30, 0  ;;  %v1303_v4 = vadd.s32 %v1301_v24, %v1295_v26  ;;  %vm1304_vm14 = vc.u32 %v1302_v51, %v1298_v20  ;;  %v1276_v48 = vsel %vm1274_vm3, %v2647_v37, 2102212464 }
 0x18c   : > { %v883_v63 = vsel %vm1683_vm13, 0, %v1682_v30  ;;  %v1305_v39 = vsel %vm1304_vm14, 1, %v1851_v0  ;;  %vm1322_vm15 = vc.u32 %v1314_v59, %v1318_v62  ;;  %v1324_v50 = vadd.s32 %v1318_v62, %v1314_v59 }
 0x18d   : > { %v884_v17 = vsub.s32 32, %v883_v63  ;;  %v888_v60 = vsub.s32 4294967266, %v883_v63  ;;  %v885_v11 = vshll.u32 %v876_v34, %v883_v63  ;;  %v1307_v33 = vadd.s32 %v1305_v39, %v1303_v4 }
 0x18e   : > { %v1323_v40 = vsel %vm1322_vm15, 1, %v1851_v0  ;;  %v2699_v16 = vadd.f32 %v306_v38, %v2474_v8  ;;  %vm1326_vm0 = vc.u32 %v1324_v50, %v1320_v21  ;;  %v1299_v44 = vshrl.u32 %v1294_v3, 16 }
 0x18f   : > { %v886_v23 = vshrl.u32 %v868_v29, %v884_v17  ;;  %v889_v15 = vadd.s32 127, %v888_v60  ;;  %v1308_v52 = vadd.s32 %v1307_v33, %v1297_v18  ;;  %v1325_v34 = vadd.s32 %v1323_v40, %v1317_v12 }
 0x190   : > { %v1327_v14 = vsel %vm1326_vm0, 1, %v1851_v0  ;;  %v1275_v22 = vsel %vm1271_vm4, %v1255_v2, %v2643_v42  ;;  %v1319_v56 = vshrl.u32 %v1315_v61, 16  ;;  %v898_v31 = vsub.s32 4, %v2655_v13 }
 0x191   : > { %v887_v32 = vor.u32 %v886_v23, %v885_v11  ;;  %v890_v25 = vshll.u32 %v889_v15, 23  ;;  %v1329_v37 = vadd.s32 %v1327_v14, %v1325_v34  ;;  %v1277_v8 = vsel %vm1273_vm5, %v2645_v28, %v1276_v48 }
 0x192   : > { %v2709_v35 = vadd.s32 %v1308_v52, %v1299_v44  ;;  %v1397_v46 = vand.u32 2139095040, %v2699_v16  ;;  %v1321_v1 = vshrl.u32 %v1316_v10, 16  ;;  %v2712_v54 = vadd.s32 %v1324_v50, %v1320_v21 }
 0x193   : > { %v891_v53 = vor.u32 4788187, %v890_v25  ;;  %v894_v5 = vcvt.s32.f32 %v887_v32  ;;  %v1330_v55 = vadd.s32 %v1329_v37, %v1319_v56  ;;  %vm776_vm2 = vcmp.lt.s32.totalorder %v2478_v27, 0 }
 0x194   : > { %v1398_v36 = vshrl.u32 %v1397_v46, 23  ;;  %v1278_v30 = vsel %vm1272_vm6, %v1275_v22, %v1277_v8  ;;  %v899_v28 = vsel %vm776_vm2, %v898_v31, %v2655_v13  ;;  %vm1334_vm1 = vc.u32 %v2709_v35, %v2712_v54 }
 0x195   : > { %v892_v3 = vand.u32 2147483647, %v891_v53  ;;  %v1331_v2 = vadd.s32 %v1330_v55, %v1321_v1  ;;  %vm775_vm3 = vcmp.le.f32.partialorder %v774_v57, 0.7853982  ;;  %v1332_v61 = vmul.u32 %v2675_v9, %v1278_v30 }
 0x196   : > { %v1693_v26 = vadd.s32 4294967169, %v1398_v36  ;;  %v901_v18 = vsel %vm775_vm3, 0, %v899_v28  ;;  %v1394_v19 = vand.u32 2147483647, %v2699_v16  ;;  %vm917_vm8 = vweird.f32 %v2478_v27 }
 0x197   : > { %v895_v42 = vmul.f32 %v894_v5, %v892_v3  ;;  %v1335_v51 = vadd.s32 1, %v1331_v2  ;;  %v918_v17 = vadd.s32 3, %v901_v18  ;;  %vm2801_vm15 = vcmp.le.f32.partialorder %v1239_v6, 0.7853982 }
 0x198   : > { %v1404_v10 = vadd.s32 1, %v1693_v26  ;;  %v1401_v57 = vand.u32 8388607, %v1394_v19  ;;  %vm1241_vm0 = vcmp.lt.s32.totalorder %v2481_v7, 0 }
 0x199   : > { %v896_v20 = vxor.u32 2147483648, %v895_v42  ;;  %v1336_v24 = vsel %vm1334_vm1, %v1335_v51, %v1331_v2  ;;  %v919_v21 = vand.u32 3, %v918_v17  ;;  %v1333_v51 = vadd.s32 %v2712_v54, %v2709_v35 }
 0x19a   : > { %v1337_v13 = vadd.s32 %v1336_v24, %v1332_v61  ;;  %vm1405_vm4 = vcmp.gt.s32.totalorder %v1404_v10, 0  ;;  %v1402_v48 = vor.u32 8388608, %v1401_v57 }
 0x19b   : > { %v897_v29 = vsel %vm776_vm2, %v896_v20, %v895_v42  ;;  %v1406_v62 = vsel %vm1405_vm4, %v1404_v10, 0  ;;  %vm921_vm5 = vcmp.eq.s32.totalorder %v919_v21, 0  ;;  %vm920_vm7 = vcmp.lt.s32.totalorder %v919_v21, 2 }
 0x19c   : > { %v900_v63 = vsel %vm775_vm3, %v2478_v27, %v897_v29  ;;  %v1338_v60 = vadd.s32 536870912, %v1337_v13  ;;  %v1408_v39 = vand.u32 31, %v1406_v62  ;;  %v2734_v40 = vshrl.u32 %v1406_v62, 5 }
 0x19d   : > { %v902_v4 = vmul.f32 %v900_v63, %v900_v63  ;;  %vm924_vm9 = vcmp.eq.s32.totalorder %v919_v21, 2 }
 0x19e   : > { %v2727_v9 = vshrl.u32 %v1338_v60, 30  ;;  %v2729_v11 = vsub.s32 32, %v1408_v39  ;;  %v1411_v32 = vshll.u32 %v1852_v41, %v1408_v39  ;;  %v1414_v14 = vshll.u32 %v1853_v43, %v1408_v39 }
 0x19f   : > { %v903_v59 = vmul.f32 -0.001358992, %v902_v4  ;;  %v910_v38 = vmul.f32 -0.00019511016, %v902_v4  ;;  %v1417_v46 = vshll.u32 %v1854_v45, %v1408_v39  ;;  %v1423_v1 = vshll.u32 %v1856_v49, %v1408_v39 }
 0x1a0   : > { %v1340_v23 = vshll.u32 %v2727_v9, 30  ;;  %v1412_v25 = vshrl.u32 %v1853_v43, %v2729_v11  ;;  %v1415_v53 = vshrl.u32 %v1854_v45, %v2729_v11  ;;  %v1418_v56 = vshrl.u32 %v1855_v47, %v2729_v11 }
 0x1a1   : > { %v904_v33 = vadd.f32 0.041655596, %v903_v59  ;;  %v911_v12 = vadd.f32 0.008332121, %v910_v38  ;;  %v1421_v37 = vshrl.u32 %v1856_v49, %v2729_v11  ;;  %v1420_v43 = vshll.u32 %v1855_v47, %v1408_v39 }
 0x1a2   : > { %v2732_v52 = vsub.s32 %v1337_v13, %v1340_v23  ;;  %v2752_v5 = vor.u32 %v1412_v25, %v1411_v32  ;;  %v1424_v55 = vshrl.u32 %v1857_v58, %v2729_v11  ;;  %v2757_v2 = vor.u32 %v1415_v53, %v1414_v14 }
 0x1a3   : > { %v905_v15 = vmul.f32 %v904_v33, %v902_v4  ;;  %v912_v50 = vmul.f32 %v911_v12, %v902_v4  ;;  %v2759_v45 = vor.u32 %v1418_v56, %v1417_v46  ;;  %v1422_v47 = vor.u32 %v1421_v37, %v1420_v43 }
 0x1a4   : > { %vm1342_vm6 = vcmp.lt.s32.totalorder %v2732_v52, 0  ;;  %v1343_v22 = vsub.s32 0, %v2732_v52  ;;  %v1425_v28 = vor.u32 %v1424_v55, %v1423_v1  ;;  %vm1426_vm10 = vcmp.lt.s32.totalorder %v2734_v40, 1 }
 0x1a5   : > { %v906_v34 = vadd.f32 -0.4999988, %v905_v15  ;;  %v913_v44 = vadd.f32 -0.16666654, %v912_v50  ;;  %vm1427_vm12 = vcmp.lt.s32.totalorder %v2734_v40, 2  ;;  %vm1428_vm11 = vcmp.lt.s32.totalorder %v2734_v40, 3 }
 0x1a6   : > { %v1344_v3 = vsel %vm1342_vm6, %v1343_v22, %v2732_v52  ;;  %v2766_v49 = vshll.u32 %v1402_v48, 8  ;;  %vm1429_vm14 = vcmp.lt.s32.totalorder %v2734_v40, 4  ;;  %v1434_v10 = vsel %vm1426_vm10, %v2752_v5, %v2757_v2 }
 0x1a7   : > { %v907_v31 = vmul.f32 %v906_v34, %v902_v4  ;;  %v914_v8 = vmul.f32 %v913_v44, %v902_v4  ;;  %v1345_v30 = vclz %v1344_v3  ;;  %v1435_v35 = vsel %vm1429_vm14, %v1422_v47, 920167782 }
 0x1a8   : > { %v1438_v54 = vsel %vm1426_vm10, %v2757_v2, %v2759_v45  ;;  %v1439_v18 = vsel %vm1429_vm14, %v1425_v28, 1326507024  ;;  %v1436_v60 = vsel %vm1428_vm11, %v2759_v45, %v1435_v35  ;;  %v1443_v21 = vand.u32 65535, %v2766_v49 }
 0x1a9   : > { %v908_v36 = vadd.f32 1.0, %v907_v31  ;;  %v915_v42 = vadd.f32 1.0, %v914_v8  ;;  %v1691_v61 = vadd.s32 4294967294, %v1345_v30  ;;  %v1440_v39 = vsel %vm1428_vm11, %v1422_v47, %v1439_v18 }
 0x1aa   : > { %v1437_v33 = vsel %vm1427_vm12, %v1434_v10, %v1436_v60  ;;  %v1441_v12 = vsel %vm1427_vm12, %v1438_v54, %v1440_v39  ;;  %v1444_v27 = vshrl.u32 %v2766_v49, 16  ;;  %v1431_v10 = vsel %vm1429_vm14, %v2759_v45, 2102212464 }
 0x1ab   : > { %v916_v26 = vmul.f32 %v915_v42, %v900_v63  ;;  %v925_v20 = vxor.u32 2147483648, %v908_v36  ;;  %vm1692_vm13 = vcmp.lt.s32.totalorder %v1691_v61, 0  ;;  %v1467_v23 = vand.u32 65535, %v1437_v33 }
 0x1ac   : > { %v1348_v29 = vsel %vm1692_vm13, 0, %v1691_v61  ;;  %v1468_v15 = vshrl.u32 %v1437_v33, 16  ;;  %v1446_v32 = vshrl.u32 %v1441_v12, 16  ;;  %vm1395_vm13 = vcmp.le.f32.partialorder %v1394_v19, 0.7853982 }
 0x1ad   : > { %v922_v58 = vxor.u32 2147483648, %v916_v26  ;;  %v926_v63 = vsel %vm924_vm9, %v925_v20, %v916_v26  ;;  %v1349_v13 = vsub.s32 32, %v1348_v29  ;;  %v1353_v4 = vsub.s32 4294967266, %v1348_v29 }
 0x1ae   : > { %v1350_v17 = vshll.u32 %v2732_v52, %v1348_v29  ;;  %v1445_v52 = vand.u32 65535, %v1441_v12  ;;  %v1470_v25 = vmul.u32 %v1468_v15, %v1443_v21  ;;  %v1448_v14 = vmul.u32 %v1446_v32, %v1443_v21 }
 0x1af   : > { %v923_v24 = vsel %vm921_vm5, %v908_v36, %v922_v58  ;;  %v1351_v38 = vshrl.u32 %v1333_v51, %v1349_v13  ;;  %v1354_v57 = vadd.s32 127, %v1353_v4  ;;  %v1469_v22 = vmul.u32 %v1467_v23, %v1443_v21 }
 0x1b0   : > { %v927_v62 = vsel %vm920_vm7, %v923_v24, %v926_v63  ;;  %v1449_v53 = vmul.u32 %v1445_v52, %v1444_v27  ;;  %v1471_v56 = vmul.u32 %v1467_v23, %v1444_v27  ;;  %v1473_v37 = vshll.u32 %v1470_v25, 16 }
 0x1b1   : > { %v928_v59 = vsel %vm917_vm8, nan, %v927_v62  ;;  %v1352_v50 = vor.u32 %v1351_v38, %v1350_v17  ;;  %v1355_v48 = vshll.u32 %v1354_v57, 23  ;;  %v1447_v46 = vmul.u32 %v1445_v52, %v1443_v21 }
 0x1b2   : > { %1552 = vst [vmem:[%s2276_s5 + $0x18] sm:$0xff] %v928_v59  ;;  %v1451_v43 = vshll.u32 %v1448_v14, 16  ;;  %v1450_v3 = vmul.u32 %v1446_v32, %v1444_v27  ;;  %v1453_v1 = vshll.u32 %v1449_v53, 16  ;;  %v1472_v55 = vmul.u32 %v1468_v15, %v1444_v27 }
 0x1b3   : > { %v1356_v44 = vor.u32 4788187, %v1355_v48  ;;  %v1359_v8 = vcvt.s32.f32 %v1352_v50  ;;  %vm1477_vm2 = vc.u32 %v1469_v22, %v1473_v37  ;;  %v1475_v47 = vshll.u32 %v1471_v56, 16 }
 0x1b4   : > { %vm1455_vm1 = vc.u32 %v1447_v46, %v1451_v43  ;;  %v1457_v36 = vadd.s32 %v1451_v43, %v1447_v46  ;;  %v1478_v42 = vsel %vm1477_vm2, 1, %v1851_v0  ;;  %v1479_v28 = vadd.s32 %v1473_v37, %v1469_v22 }
 0x1b5   : > { %v1357_v31 = vand.u32 2147483647, %v1356_v44  ;;  %v1456_v30 = vsel %vm1455_vm1, 1, %v1851_v0  ;;  %v1480_v26 = vadd.s32 %v1478_v42, %v1472_v55  ;;  %v1363_v51 = vsub.s32 4, %v2727_v9 }
 0x1b6   : > { %v1458_v61 = vadd.s32 %v1456_v30, %v1450_v3  ;;  %vm1459_vm3 = vc.u32 %v1457_v36, %v1453_v1  ;;  %v1410_v58 = vshrl.u32 %v1852_v41, %v2729_v11  ;;  %vm1481_vm4 = vc.u32 %v1479_v28, %v1475_v47 }
 0x1b7   : > { %v1360_v6 = vmul.f32 %v1359_v8, %v1357_v31  ;;  %v1460_v29 = vsel %vm1459_vm3, 1, %v1851_v0  ;;  %v1452_v54 = vshrl.u32 %v1448_v14, 16  ;;  %v1482_v24 = vsel %vm1481_vm4, 1, %v1851_v0 }
 0x1b8   : > { %v1462_v18 = vadd.s32 %v1460_v29, %v1458_v61  ;;  %v1430_v41 = vsel %vm1426_vm10, %v1410_v58, %v2752_v5  ;;  %v1474_v11 = vshrl.u32 %v1470_v25, 16  ;;  %v1484_v45 = vadd.s32 %v1482_v24, %v1480_v26 }
 0x1b9   : > { %v1361_v20 = vxor.u32 2147483648, %v1360_v6  ;;  %v1432_v4 = vsel %vm1428_vm11, %v2757_v2, %v1431_v10  ;;  %v1454_v62 = vshrl.u32 %v1449_v53, 16  ;;  %v1476_v60 = vshrl.u32 %v1471_v56, 16 }
 0x1ba   : > { %v1463_v17 = vadd.s32 %v1462_v18, %v1452_v54  ;;  %v1485_v39 = vadd.s32 %v1484_v45, %v1474_v11  ;;  %v1483_v57 = vadd.s32 %v1479_v28, %v1475_v47  ;;  %v1364_v33 = vsel %vm1241_vm0, %v1363_v51, %v2727_v9 }
 0x1bb   : > { %v1362_v35 = vsel %vm1241_vm0, %v1361_v20, %v1360_v6  ;;  %v1433_v5 = vsel %vm1427_vm12, %v1430_v41, %v1432_v4  ;;  %v1366_v15 = vsel %vm2801_vm15, 0, %v1364_v33  ;;  %vm1382_vm10 = vweird.f32 %v2481_v7 }
 0x1bc   : > { %v1365_v63 = vsel %vm2801_vm15, %v2481_v7, %v1362_v35  ;;  %v1464_v38 = vadd.s32 %v1463_v17, %v1454_v62  ;;  %v1486_v12 = vadd.s32 %v1485_v39, %v1476_v60  ;;  %v1487_v52 = vmul.u32 %v2766_v49, %v1433_v5 }
 0x1bd   : > { %v1367_v13 = vmul.f32 %v1365_v63, %v1365_v63  ;;  %v1383_v9 = vadd.s32 3, %v1366_v15  ;;  %vm1396_vm11 = vcmp.lt.s32.totalorder %v2699_v16, 0  ;;  %vm1537_vm2 = vweird.f32 %v2699_v16 }
 0x1be   : > { %vm1489_vm5 = vc.u32 %v1464_v38, %v1483_v57  ;;  %v1490_v2 = vadd.s32 1, %v1486_v12  ;;  %v1488_v26 = vadd.s32 %v1483_v57, %v1464_v38 }
 0x1bf   : > { %v1368_v0 = vmul.f32 -0.001358992, %v1367_v13  ;;  %v1375_v59 = vmul.f32 -0.00019511016, %v1367_v13  ;;  %v1384_v31 = vand.u32 3, %v1383_v9 }
 0x1c0   : > { %v1491_v32 = vsel %vm1489_vm5, %v1490_v2, %v1486_v12 }
 0x1c1   : > { %v1369_v21 = vadd.f32 0.041655596, %v1368_v0  ;;  %v1376_v23 = vadd.f32 0.008332121, %v1375_v59  ;;  %v1492_v44 = vadd.s32 %v1491_v32, %v1487_v52  ;;  %vm1385_vm6 = vcmp.lt.s32.totalorder %v1384_v31, 2 }
 0x1c2   : > { %vm1386_vm7 = vcmp.eq.s32.totalorder %v1384_v31, 0  ;;  %vm1389_vm8 = vcmp.eq.s32.totalorder %v1384_v31, 2 }
 0x1c3   : > { %v1370_v50 = vmul.f32 %v1369_v21, %v1367_v13  ;;  %v1377_v48 = vmul.f32 %v1376_v23, %v1367_v13  ;;  %v1493_v53 = vadd.s32 536870912, %v1492_v44 }
 0x1c5   : > { %v1371_v27 = vadd.f32 -0.4999988, %v1370_v50  ;;  %v1378_v25 = vadd.f32 -0.16666654, %v1377_v48  ;;  %v1494_v37 = vshrl.u32 %v1493_v53, 30 }
 0x1c7   : > { %v1372_v14 = vmul.f32 %v1371_v27, %v1367_v13  ;;  %v1379_v40 = vmul.f32 %v1378_v25, %v1367_v13  ;;  %v1495_v46 = vshll.u32 %v1494_v37, 30  ;;  %v1518_v11 = vsub.s32 4, %v1494_v37 }
 0x1c9   : > { %v1373_v22 = vadd.f32 1.0, %v1372_v14  ;;  %v1380_v56 = vadd.f32 1.0, %v1379_v40  ;;  %v1496_v3 = vsub.s32 %v1492_v44, %v1495_v46  ;;  %v1519_v17 = vsel %vm1396_vm11, %v1518_v11, %v1494_v37 }
 0x1ca   : > { %v1521_v0 = vsel %vm1395_vm13, 0, %v1519_v17 }
 0x1cb   : > { %v1381_v8 = vmul.f32 %v1380_v56, %v1365_v63  ;;  %v1390_v34 = vxor.u32 2147483648, %v1373_v22  ;;  %vm1497_vm9 = vcmp.lt.s32.totalorder %v1496_v3, 0  ;;  %v1498_v55 = vsub.s32 0, %v1496_v3 }
 0x1cc   : > { %v1538_v5 = vadd.s32 3, %v1521_v0 }
 0x1cd   : > { %v1387_v43 = vxor.u32 2147483648, %v1381_v8  ;;  %v1391_v1 = vsel %vm1389_vm8, %v1390_v34, %v1381_v8  ;;  %v1499_v42 = vsel %vm1497_vm9, %v1498_v55, %v1496_v3 }
 0x1ce   : > { %v1500_v30 = vclz %v1499_v42  ;;  %v1539_v2 = vand.u32 3, %v1538_v5 }
 0x1cf   : > { %v1388_v49 = vsel %vm1386_vm7, %v1373_v22, %v1387_v43 }
 0x1d0   : > { %v1392_v6 = vsel %vm1385_vm6, %v1388_v49, %v1391_v1  ;;  %v1694_v47 = vadd.s32 4294967294, %v1500_v30  ;;  %vm1541_vm14 = vcmp.eq.s32.totalorder %v1539_v2, 0  ;;  %vm1544_vm15 = vcmp.eq.s32.totalorder %v1539_v2, 2 }
 0x1d1   : > { %v1393_v36 = vsel %vm1382_vm10, nan, %v1392_v6  ;;  %vm1540_vm0 = vcmp.lt.s32.totalorder %v1539_v2, 2 }
 0x1d2   : > { %1555 = vst [vmem:[%s2276_s5 + $0x30] sm:$0xff] %v1393_v36  ;;  %vm1695_vm12 = vcmp.lt.s32.totalorder %v1694_v47, 0 }
 0x1d3   : > { %v1503_v28 = vsel %vm1695_vm12, 0, %v1694_v47 }
 0x1d4   : > { %v1504_v20 = vsub.s32 32, %v1503_v28  ;;  %v1508_v51 = vsub.s32 4294967266, %v1503_v28  ;;  %v1505_v61 = vshll.u32 %v1496_v3, %v1503_v28 }
 0x1d6   : > { %v1506_v58 = vshrl.u32 %v1488_v26, %v1504_v20  ;;  %v1509_v10 = vadd.s32 127, %v1508_v51 }
 0x1d8   : > { %v1507_v29 = vor.u32 %v1506_v58, %v1505_v61  ;;  %v1510_v35 = vshll.u32 %v1509_v10, 23 }
 0x1da   : > { %v1511_v54 = vor.u32 4788187, %v1510_v35  ;;  %v1514_v24 = vcvt.s32.f32 %v1507_v29 }
 0x1dc   : > { %v1512_v18 = vand.u32 2147483647, %v1511_v54 }
 0x1de   : > { %v1515_v7 = vmul.f32 %v1514_v24, %v1512_v18 }
 0x1e0   : > { %v1516_v63 = vxor.u32 2147483648, %v1515_v7 }
 0x1e2   : > { %v1517_v41 = vsel %vm1396_vm11, %v1516_v63, %v1515_v7 }
 0x1e3   : > { %v1520_v45 = vsel %vm1395_vm13, %v2699_v16, %v1517_v41 }
 0x1e4   : > { %v1522_v13 = vmul.f32 %v1520_v45, %v1520_v45 }
 0x1e6   : > { %v1523_v4 = vmul.f32 -0.001358992, %v1522_v13  ;;  %v1530_v62 = vmul.f32 -0.00019511016, %v1522_v13 }
 0x1e8   : > { %v1524_v60 = vadd.f32 0.041655596, %v1523_v4  ;;  %v1531_v39 = vadd.f32 0.008332121, %v1530_v62 }
 0x1ea   : > { %v1525_v59 = vmul.f32 %v1524_v60, %v1522_v13  ;;  %v1532_v38 = vmul.f32 %v1531_v39, %v1522_v13 }
 0x1ec   : > { %v1526_v57 = vadd.f32 -0.4999988, %v1525_v59  ;;  %v1533_v33 = vadd.f32 -0.16666654, %v1532_v38 }
 0x1ee   : > { %v1527_v19 = vmul.f32 %v1526_v57, %v1522_v13  ;;  %v1534_v12 = vmul.f32 %v1533_v33, %v1522_v13 }
 0x1f0   : > { %v1528_v21 = vadd.f32 1.0, %v1527_v19  ;;  %v1535_v23 = vadd.f32 1.0, %v1534_v12 }
 0x1f2   : > { %v1536_v15 = vmul.f32 %v1535_v23, %v1520_v45  ;;  %v1545_v50 = vxor.u32 2147483648, %v1528_v21 }
 0x1f4   : > { %v1542_v48 = vxor.u32 2147483648, %v1536_v15  ;;  %v1546_v32 = vsel %vm1544_vm15, %v1545_v50, %v1536_v15 }
 0x1f6   : > { %v1543_v52 = vsel %vm1541_vm14, %v1528_v21, %v1542_v48 }
 0x1f7   : > { %v1547_v27 = vsel %vm1540_vm0, %v1543_v52, %v1546_v32 }
 0x1f8   : > { %v1548_v25 = vsel %vm1537_vm2, nan, %v1547_v27 }
 0x1f9   : > { %1556 = vst [vmem:[%s2276_s5 + $0x38] sm:$0xff] %v1548_v25 }
 0x1fa   : > { %1798 = shalt.err (!%p1795_p5)
}
 0x1fb   : > { %s1858_s29 = smov 256   ;;  %s1859_s30 = smov 16  }
 0x1fc   : > { %1705 = dma.vmem_to_hbm [thread:$0]  (%p1920_p4), %s1573_s10, 1024, %s1575_s11, %s1558_s15, %s1858_s29, %s1858_s29, %s1859_s30  }
 0x1fd PF: > { %p1711_p6 = scmp.ge.s32.totalorder %s1849_s17, 2  ;;  %s1589_s4 = sand.u32 1, %s1829_s12  }
 0x1fe   : > { %s1590_s5 = scalar_lea.sflag [#allocation3], %s1589_s4 }
 0x1ff   : > { %p1708_p7 = pnand %p1711_p6, %p1927_p8 }
 0x201   : > { %p1709_p9 = pneg %p1708_p7 }
 0x203   : > { %1824 = dma.done.wait (%p1709_p9), %s1590_s5, 1024  }
 0x204   : > { %1826 = vsyncadd (%p1709_p9), %s1590_s5, 4294966272  ;;  %s16_s17 = sadd.s32 1, %s1849_s17   ;;  %s2898_s12 = smov %s1833_s13 }
 0x205   : > { %p13_p10 = scmp.ge.s32.totalorder %s16_s17, 4   ;;  %s2899_s13 = smov %s1837_s14 }
 0x206   : > { %s2900_s14 = smov %s1933_s25  ;;  %s2901_s15 = smov %s1845_s16 }
 0x207   : > { %s2902_s16 = smov %s2904_s20  ;;  %15 = sbr.rel (!%p13_p10) target bundleno = 4 (0x4), region = 67 }
 0x20c   :  { %1596 = vsyncpa [#allocation3], 1 }
 0x20d   :  { %1598 = vsyncpa [#allocation3 + $0x1], 1 }

</bundles_post_ra>
